<compile_context>
chip_gen: v7x
topology: tpu7x:2x2x1
jax: 0.10.0
libtpu: 0.0.40
codegen_flags: <defaults>
</compile_context>

<pallas_src>
import functools
import math

import numpy as np
import jax
import jax.numpy as jnp
from jax.experimental import pallas as pl
from jax.experimental.pallas import tpu as pltpu


def _elu(v):
    # F.elu with alpha=1 (exp(min(v,0))-1 keeps the unselected branch finite).
    return jnp.where(v > 0, v, jnp.exp(jnp.minimum(v, 0.0)) - 1.0)


def cmsa_kernel(x_ref, w_ref, b_ref, tile_ref, mask_ref, o_ref, *,
                kernel_dim, n_convs):
    # x_ref:    (1, C, L)
    # w_ref:    (n_convs*C, K*C)  fused conv weights; conv order permuted so the
    #                             output rows are [Q_elu; Q_tanh; K_elu; K_tanh; V_elu; V_tanh]
    # b_ref:    (n_convs*C, 1)
    # tile_ref: (Lout, H2*Lout)   0/1 lane-tiling matrix, H2 = 2*n_heads
    # mask_ref: (2C,   H2*Lout)   0/1 block-diagonal head mask
    # o_ref:    (1, C, Lout)
    x = x_ref[0]                                     # (C, L)
    C, L = x.shape
    K = kernel_dim
    Lout = L - K + 1
    scale = 1.0 / math.sqrt(C)                       # module divides by sqrt(input_dim)
    f32 = jnp.float32

    # ---- all 6 convs as ONE matmul over an im2col slab ---------------------
    x_col = jnp.concatenate([x[:, k:k + Lout] for k in range(K)], axis=0)   # (K*C, Lout)
    h = jax.lax.dot_general(w_ref[...], x_col, (((1,), (0,)), ((), ())),
                            preferred_element_type=f32)
    h = h + b_ref[...]                               # (n_convs*C, Lout)

    # first n_convs-1 convs -> ELU, last conv -> tanh (all row splits 8-aligned)
    n_elu = (n_convs - 1) * C
    h = jnp.concatenate([_elu(h[:n_elu]), jnp.tanh(h[n_elu:])], axis=0)

    q_all = h[0:2 * C]            # [h0; h3]   (2C, Lout)
    k_all = h[2 * C:4 * C]        # [h1; h4]
    v_all = h[4 * C:6 * C]        # [h2; h5]

    tile = tile_ref[...]          # (Lout, H2*Lout)
    mask = mask_ref[...]          # (2C,   H2*Lout)

    # block-diagonal packing: kbd[c, h*Lout+m] = K[c, m] iff row c is in head h
    kbd = jax.lax.dot_general(k_all, tile, (((1,), (0,)), ((), ())),
                              preferred_element_type=f32) * mask
    vbd = jax.lax.dot_general(v_all, tile, (((1,), (0,)), ((), ())),
                              preferred_element_type=f32) * mask

    # every head's (Lout, Lout) score block, side by side along lanes
    s = jax.lax.dot_general(q_all, kbd, (((0,), (0,)), ((), ())),
                            preferred_element_type=f32) * scale    # (Lout, H2*Lout)
    # the row-global max is constant within each head's column group, so it is
    # a valid stabilizer for every per-head softmax
    e = jnp.exp(s - jnp.max(s, axis=-1, keepdims=True))

    # per-(row, head) softmax denominator, broadcast back onto channel rows
    denom = jax.lax.dot_general(mask, e, (((1,), (1,)), ((), ())),
                                preferred_element_type=f32)        # (2C, Lout)
    # unnormalized attention outputs of all heads, already concatenated in
    # channel order: rows [0:C) = elu multihead, rows [C:2C) = tanh multihead
    o_un = jax.lax.dot_general(vbd, e, (((1,), (1,)), ((), ())),
                               preferred_element_type=f32)         # (2C, Lout)
    o_all = o_un * pl.reciprocal(denom, approx=True)

    # elementwise product of the two multihead outputs + LayerNorm over (C, Lout)
    y = o_all[:C] * o_all[C:]
    mean = jnp.mean(y)
    cen = y - mean
    var = jnp.mean(cen * cen)
    o_ref[0] = (cen * jax.lax.rsqrt(var + 1e-5)).astype(o_ref.dtype)


def conv_multihead_self_attention(x, w, b, *, n_heads):
    """x: (B, C, L); w: (n_convs, C_out, C_in, K) (PyTorch Conv1d layout); b: (n_convs, C)."""
    B, C, L = x.shape
    n_convs, _, _, K = w.shape
    Lout = L - K + 1
    assert n_convs == 6, "module uses 6 convs (Q/K/V for two multihead passes)"
    assert C % n_heads == 0
    d = C // n_heads
    H2 = 2 * n_heads

    # Interleave the two multihead groups so the fused conv rows come out as
    # [Q_elu; Q_tanh; K_elu; K_tanh; V_elu; V_tanh]; the tanh conv stays last.
    perm = jnp.array((0, 3, 1, 4, 2, 5))
    w_p = w[perm]                                    # (6, C, C, K)
    b_p = b[perm]                                    # (6, C)

    # One fused weight matrix: W_all[i*C+co, k*C+ci] = w_p[i, co, ci, k]
    w_all = jnp.transpose(w_p, (0, 1, 3, 2)).reshape(n_convs * C, K * C)
    b_all = b_p.reshape(n_convs * C, 1)

    # Constant packing helpers for the block-diagonal multi-head attention.
    cols = np.arange(H2 * Lout)
    tile_mat = ((cols[None, :] % Lout) ==
                np.arange(Lout)[:, None]).astype(np.float32)        # (Lout, H2*Lout)
    head_mask = ((cols[None, :] // Lout) ==
                 (np.arange(2 * C)[:, None] // d)).astype(np.float32)  # (2C, H2*Lout)
    tile_mat = jnp.asarray(tile_mat)
    head_mask = jnp.asarray(head_mask)

    kernel = functools.partial(cmsa_kernel, kernel_dim=K, n_convs=n_convs)
    return pl.pallas_call(
        kernel,
        out_shape=jax.ShapeDtypeStruct((B, C, Lout), x.dtype),
        grid_spec=pltpu.PrefetchScalarGridSpec(
            num_scalar_prefetch=0,
            grid=(B,),
            in_specs=[
                pl.BlockSpec((1, C, L), lambda bi: (bi, 0, 0)),
                pl.BlockSpec((n_convs * C, K * C), lambda bi: (0, 0)),
                pl.BlockSpec((n_convs * C, 1), lambda bi: (0, 0)),
                pl.BlockSpec((Lout, H2 * Lout), lambda bi: (0, 0)),
                pl.BlockSpec((2 * C, H2 * Lout), lambda bi: (0, 0)),
            ],
            out_specs=pl.BlockSpec((1, C, Lout), lambda bi: (bi, 0, 0)),
        ),
        compiler_params=pltpu.CompilerParams(
            dimension_semantics=("parallel",)),
    )(x, w_all, b_all, tile_mat, head_mask)


def reference(x, w, b, n_heads):
    """Pure-JAX mirror of the PyTorch forward (default matmul precision, like the kernel)."""
    B, C, L = x.shape
    n_convs = w.shape[0]
    hid = []
    for i in range(n_convs):
        y = jax.lax.conv_general_dilated(
            x, w[i], window_strides=(1,), padding="VALID",
            dimension_numbers=("NCH", "OIH", "NCH")) + b[i][None, :, None]
        hid.append(jax.nn.elu(y) if i < n_convs - 1 else jnp.tanh(y))
    d = C // n_heads

    def multihead(q, k, v):
        outs = []
        for h in range(n_heads):
            qh, kh, vh = (t[:, h * d:(h + 1) * d, :] for t in (q, k, v))
            s = jnp.einsum("bdl,bdm->blm", qh, kh) / math.sqrt(C)
            p = jax.nn.softmax(s, axis=-1)
            outs.append(jnp.einsum("blm,bdm->bdl", p, vh))
        return jnp.concatenate(outs, axis=1)

    elu_hid = multihead(hid[0], hid[1], hid[2])
    tanh_hid = multihead(hid[3], hid[4], hid[5])
    y = elu_hid * tanh_hid
    mean = jnp.mean(y, axis=(1, 2), keepdims=True)
    var = jnp.mean((y - mean) ** 2, axis=(1, 2), keepdims=True)
    return (y - mean) / jnp.sqrt(var + 1e-5)


if __name__ == "__main__":
    # Shapes consistent with the module: input_dim divisible by 10 heads.
    B, C, L = 2, 40, 16
    K = 3
    n_heads = 10
    n_convs = 6

    key = jax.random.PRNGKey(0)
    kw, kb, kx = jax.random.split(key, 3)

    # Deterministic param init (shapes from nn.Conv1d(C, C, K)):
    #   weight: xavier_normal -> std = sqrt(2/(fan_in+fan_out)), fan = C*K
    #   bias:   Conv1d default -> U(-1/sqrt(fan_in), 1/sqrt(fan_in))
    fan = C * K
    std = math.sqrt(2.0 / (fan + fan))
    w = std * jax.random.normal(kw, (n_convs, C, C, K), jnp.float32)
    bound = 1.0 / math.sqrt(fan)
    b = jax.random.uniform(kb, (n_convs, C), jnp.float32, -bound, bound)
    x = jax.random.normal(kx, (B, C, L), jnp.float32)

    fn = jax.jit(functools.partial(conv_multihead_self_attention, n_heads=n_heads))
    out = jax.block_until_ready(fn(x, w, b))

    ref = reference(x, w, b, n_heads)
    assert out.shape == (B, C, L - K + 1), out.shape
    # Both the kernel and the reference use the TPU's default one-pass bf16
    # MXU precision (HIGHEST was dropped per the perf review); the tolerance
    # covers bf16 rounding / accumulation-order differences and the packed
    # softmax (approx-reciprocal) formulation.
    max_err = float(jnp.max(jnp.abs(out - ref)))
    assert jnp.allclose(out, ref, rtol=2e-2, atol=2e-2), max_err
    print("KERNEL_OK")
</pallas_src>

<mosaic_0001>
module attributes {stable_mosaic.version = 11 : i64} {
  func.func @cmsa_kernel(%arg0: i32, %arg1: memref<1x40x16xf32, #tpu.memory_space<vmem>>, %arg2: memref<240x120xf32, #tpu.memory_space<vmem>>, %arg3: memref<240x1xf32, #tpu.memory_space<vmem>>, %arg4: memref<14x280xf32, #tpu.memory_space<vmem>>, %arg5: memref<80x280xf32, #tpu.memory_space<vmem>>, %arg6: memref<1x40x14xf32, #tpu.memory_space<vmem>>) attributes {dimension_semantics = [#tpu.dimension_semantics<parallel>], iteration_bounds = array<i64: 2>, scalar_prefetch = 0 : i64, scratch_operands = 0 : i64, tpu.core_type = #tpu.core_type<tc>, window_params = [{transform_indices = @transform_0, window_bounds = array<i64: 1, 40, 16>}, {pipeline_mode = #tpu.pipeline_mode<synchronous>, transform_indices = @transform_1, window_bounds = array<i64: 240, 120>}, {pipeline_mode = #tpu.pipeline_mode<synchronous>, transform_indices = @transform_2, window_bounds = array<i64: 240, 1>}, {pipeline_mode = #tpu.pipeline_mode<synchronous>, transform_indices = @transform_3, window_bounds = array<i64: 14, 280>}, {pipeline_mode = #tpu.pipeline_mode<synchronous>, transform_indices = @transform_4, window_bounds = array<i64: 80, 280>}, {transform_indices = @transform_5, window_bounds = array<i64: 1, 40, 14>}]} {
    %c0 = arith.constant 0 : index
    %c0_0 = arith.constant 0 : index
    %c0_1 = arith.constant 0 : index
    %0 = vector.load %arg1[%c0, %c0_0, %c0_1] : memref<1x40x16xf32, #tpu.memory_space<vmem>>, vector<1x40x16xf32>
    %1 = vector.shape_cast %0 : vector<1x40x16xf32> to vector<40x16xf32>
    %2 = vector.extract_strided_slice %1 {offsets = [0, 0], sizes = [40, 14], strides = [1, 1]} : vector<40x16xf32> to vector<40x14xf32>
    %3 = vector.extract_strided_slice %1 {offsets = [0, 1], sizes = [40, 14], strides = [1, 1]} : vector<40x16xf32> to vector<40x14xf32>
    %4 = vector.extract_strided_slice %1 {offsets = [0, 2], sizes = [40, 14], strides = [1, 1]} : vector<40x16xf32> to vector<40x14xf32>
    %5 = tpu.concatenate %2, %3, %4 in 0 : vector<40x14xf32>, vector<40x14xf32>, vector<40x14xf32> -> vector<120x14xf32>
    %c0_2 = arith.constant 0 : index
    %c0_3 = arith.constant 0 : index
    %6 = vector.load %arg2[%c0_2, %c0_3] : memref<240x120xf32, #tpu.memory_space<vmem>>, vector<240x120xf32>
    %cst = arith.constant dense<0.000000e+00> : vector<240x14xf32>
    %7 = tpu.matmul %6, %5, %cst {dimension_numbers = #tpu.dot_dimension_numbers<[1], [0], [0], [1], [0, 0, 1, 1], [], []>} : vector<240x120xf32>, vector<120x14xf32>, vector<240x14xf32> -> vector<240x14xf32>
    %c0_4 = arith.constant 0 : index
    %c0_5 = arith.constant 0 : index
    %8 = vector.load %arg3[%c0_4, %c0_5] : memref<240x1xf32, #tpu.memory_space<vmem>>, vector<240x1xf32>
    %9 = vector.broadcast %8 : vector<240x1xf32> to vector<240x14xf32>
    %10 = arith.addf %7, %9 : vector<240x14xf32>
    %11 = vector.extract_strided_slice %10 {offsets = [0, 0], sizes = [200, 14], strides = [1, 1]} : vector<240x14xf32> to vector<200x14xf32>
    %cst_6 = arith.constant 0.000000e+00 : f32
    %12 = vector.broadcast %cst_6 : f32 to vector<200x14xf32>
    %13 = arith.cmpf ogt, %11, %12 : vector<200x14xf32>
    %cst_7 = arith.constant 0.000000e+00 : f32
    %14 = vector.broadcast %cst_7 : f32 to vector<200x14xf32>
    %15 = arith.minimumf %11, %14 : vector<200x14xf32>
    %16 = math.exp %15 : vector<200x14xf32>
    %cst_8 = arith.constant 1.000000e+00 : f32
    %17 = vector.broadcast %cst_8 : f32 to vector<200x14xf32>
    %18 = arith.subf %16, %17 : vector<200x14xf32>
    %19 = arith.select %13, %11, %18 : vector<200x14xi1>, vector<200x14xf32>
    %20 = vector.extract_strided_slice %10 {offsets = [200, 0], sizes = [40, 14], strides = [1, 1]} : vector<240x14xf32> to vector<40x14xf32>
    %21 = math.tanh %20 : vector<40x14xf32>
    %22 = tpu.concatenate %19, %21 in 0 : vector<200x14xf32>, vector<40x14xf32> -> vector<240x14xf32>
    %23 = vector.extract_strided_slice %22 {offsets = [0, 0], sizes = [80, 14], strides = [1, 1]} : vector<240x14xf32> to vector<80x14xf32>
    %24 = vector.extract_strided_slice %22 {offsets = [80, 0], sizes = [80, 14], strides = [1, 1]} : vector<240x14xf32> to vector<80x14xf32>
    %25 = vector.extract_strided_slice %22 {offsets = [160, 0], sizes = [80, 14], strides = [1, 1]} : vector<240x14xf32> to vector<80x14xf32>
    %c0_9 = arith.constant 0 : index
    %c0_10 = arith.constant 0 : index
    %26 = vector.load %arg4[%c0_9, %c0_10] : memref<14x280xf32, #tpu.memory_space<vmem>>, vector<14x280xf32>
    %c0_11 = arith.constant 0 : index
    %c0_12 = arith.constant 0 : index
    %27 = vector.load %arg5[%c0_11, %c0_12] : memref<80x280xf32, #tpu.memory_space<vmem>>, vector<80x280xf32>
    %cst_13 = arith.constant dense<0.000000e+00> : vector<80x280xf32>
    %28 = tpu.matmul %24, %26, %cst_13 {dimension_numbers = #tpu.dot_dimension_numbers<[1], [0], [0], [1], [0, 0, 1, 1], [], []>} : vector<80x14xf32>, vector<14x280xf32>, vector<80x280xf32> -> vector<80x280xf32>
    %29 = arith.mulf %28, %27 : vector<80x280xf32>
    %cst_14 = arith.constant dense<0.000000e+00> : vector<80x280xf32>
    %30 = tpu.matmul %25, %26, %cst_14 {dimension_numbers = #tpu.dot_dimension_numbers<[1], [0], [0], [1], [0, 0, 1, 1], [], []>} : vector<80x14xf32>, vector<14x280xf32>, vector<80x280xf32> -> vector<80x280xf32>
    %31 = arith.mulf %30, %27 : vector<80x280xf32>
    %cst_15 = arith.constant dense<0.000000e+00> : vector<14x280xf32>
    %32 = tpu.matmul %23, %29, %cst_15 {dimension_numbers = #tpu.dot_dimension_numbers<[0], [0], [1], [1], [0, 1, 1, 1], [], []>} : vector<80x14xf32>, vector<80x280xf32>, vector<14x280xf32> -> vector<14x280xf32>
    %cst_16 = arith.constant 0.158113882 : f32
    %33 = vector.broadcast %cst_16 : f32 to vector<14x280xf32>
    %34 = arith.mulf %32, %33 : vector<14x280xf32>
    %cst_17 = arith.constant dense<0xFF800000> : vector<14xf32>
    %35 = vector.multi_reduction <maximumf>, %34, %cst_17 [1] : vector<14x280xf32> to vector<14xf32>
    %36 = vector.shape_cast %35 : vector<14xf32> to vector<14x1xf32>
    %37 = vector.broadcast %36 : vector<14x1xf32> to vector<14x280xf32>
    %38 = arith.subf %34, %37 : vector<14x280xf32>
    %39 = math.exp %38 : vector<14x280xf32>
    %cst_18 = arith.constant dense<0.000000e+00> : vector<80x14xf32>
    %40 = tpu.matmul %27, %39, %cst_18 {dimension_numbers = #tpu.dot_dimension_numbers<[1], [1], [0], [0], [0, 0, 1, 0], [], []>} : vector<80x280xf32>, vector<14x280xf32>, vector<80x14xf32> -> vector<80x14xf32>
    %cst_19 = arith.constant dense<0.000000e+00> : vector<80x14xf32>
    %41 = tpu.matmul %31, %39, %cst_19 {dimension_numbers = #tpu.dot_dimension_numbers<[1], [1], [0], [0], [0, 0, 1, 0], [], []>} : vector<80x280xf32>, vector<14x280xf32>, vector<80x14xf32> -> vector<80x14xf32>
    %42 = tpu.reciprocal %40 {approx = true} : vector<80x14xf32> -> vector<80x14xf32>
    %43 = arith.mulf %41, %42 : vector<80x14xf32>
    %44 = vector.extract_strided_slice %43 {offsets = [0, 0], sizes = [40, 14], strides = [1, 1]} : vector<80x14xf32> to vector<40x14xf32>
    %45 = vector.extract_strided_slice %43 {offsets = [40, 0], sizes = [40, 14], strides = [1, 1]} : vector<80x14xf32> to vector<40x14xf32>
    %46 = arith.mulf %44, %45 : vector<40x14xf32>
    %47 = vector.shape_cast %46 : vector<40x14xf32> to vector<1x40x14xf32>
    %cst_20 = arith.constant dense<0.000000e+00> : vector<1xf32>
    %48 = vector.multi_reduction <add>, %47, %cst_20 [1, 2] : vector<1x40x14xf32> to vector<1xf32>
    %49 = vector.shape_cast %48 : vector<1xf32> to vector<1x1x1xf32>
    %50 = vector.extract %49[0, 0, 0] : f32 from vector<1x1x1xf32>
    %cst_21 = arith.constant 5.600000e+02 : f32
    %51 = arith.divf %50, %cst_21 : f32
    %52 = vector.broadcast %51 : f32 to vector<40x14xf32>
    %53 = arith.subf %46, %52 : vector<40x14xf32>
    %54 = arith.mulf %53, %53 : vector<40x14xf32>
    %55 = vector.shape_cast %54 : vector<40x14xf32> to vector<1x40x14xf32>
    %cst_22 = arith.constant dense<0.000000e+00> : vector<1xf32>
    %56 = vector.multi_reduction <add>, %55, %cst_22 [1, 2] : vector<1x40x14xf32> to vector<1xf32>
    %57 = vector.shape_cast %56 : vector<1xf32> to vector<1x1x1xf32>
    %58 = vector.extract %57[0, 0, 0] : f32 from vector<1x1x1xf32>
    %cst_23 = arith.constant 5.600000e+02 : f32
    %59 = arith.divf %58, %cst_23 : f32
    %cst_24 = arith.constant 9.99999974E-6 : f32
    %60 = arith.addf %59, %cst_24 : f32
    %61 = math.rsqrt %60 : f32
    %62 = vector.broadcast %61 : f32 to vector<40x14xf32>
    %63 = arith.mulf %53, %62 : vector<40x14xf32>
    %c0_25 = arith.constant 0 : index
    %c0_26 = arith.constant 0 : index
    %c0_27 = arith.constant 0 : index
    %64 = vector.load %arg6[%c0_25, %c0_26, %c0_27] : memref<1x40x14xf32, #tpu.memory_space<vmem>>, vector<1x40x14xf32>
    %65 = vector.shape_cast %64 : vector<1x40x14xf32> to vector<40x14xf32>
    %66 = vector.shape_cast %63 : vector<40x14xf32> to vector<1x40x14xf32>
    tpu.vector_store %arg6[%c0_25, %c0_26, %c0_27], %66 {strides = array<i32>} : memref<1x40x14xf32, #tpu.memory_space<vmem>>, vector<1x40x14xf32>,
    return
  }
  func.func @transform_0(%arg0: i32) -> (i32, i32, i32) {
    %c0_i32 = arith.constant 0 : i32
    %c0_i32_0 = arith.constant 0 : i32
    %c0_i32_1 = arith.constant 0 : i32
    return %arg0, %c0_i32, %c0_i32_0 : i32, i32, i32
  }
  func.func @transform_1(%arg0: i32) -> (i32, i32) {
    %c0_i32 = arith.constant 0 : i32
    %c0_i32_0 = arith.constant 0 : i32
    %c0_i32_1 = arith.constant 0 : i32
    return %c0_i32, %c0_i32_0 : i32, i32
  }
  func.func @transform_2(%arg0: i32) -> (i32, i32) {
    %c0_i32 = arith.constant 0 : i32
    %c0_i32_0 = arith.constant 0 : i32
    %c0_i32_1 = arith.constant 0 : i32
    return %c0_i32, %c0_i32_0 : i32, i32
  }
  func.func @transform_3(%arg0: i32) -> (i32, i32) {
    %c0_i32 = arith.constant 0 : i32
    %c0_i32_0 = arith.constant 0 : i32
    %c0_i32_1 = arith.constant 0 : i32
    return %c0_i32, %c0_i32_0 : i32, i32
  }
  func.func @transform_4(%arg0: i32) -> (i32, i32) {
    %c0_i32 = arith.constant 0 : i32
    %c0_i32_0 = arith.constant 0 : i32
    %c0_i32_1 = arith.constant 0 : i32
    return %c0_i32, %c0_i32_0 : i32, i32
  }
  func.func @transform_5(%arg0: i32) -> (i32, i32, i32) {
    %c0_i32 = arith.constant 0 : i32
    %c0_i32_0 = arith.constant 0 : i32
    %c0_i32_1 = arith.constant 0 : i32
    return %arg0, %c0_i32, %c0_i32_0 : i32, i32, i32
  }
}

</mosaic_0001>

<bundles_post_ra>
// kernel: conv_multihead_self_attention.1
= control target key start
LH: loop header
LB: loop body
LE: loop exit
PB: predicated region body
PF: predicated region fallthrough
CT: control target
= control target key end

     0   :  { %s3194_s18 = smov 0   ;;  %s4110_s0 = inlined_call_operand.vmem [shape: f32[2,40,16], index: 0, kind: input, shape index: {}]   ;;  %s4111_s1 = inlined_call_operand.vmem [shape: f32[240,120], index: 1, kind: input, shape index: {}]   ;;  %s4112_s2 = inlined_call_operand.vmem [shape: f32[240,1], index: 2, kind: input, shape index: {}]   ;;  %s4113_s3 = inlined_call_operand.vmem [shape: f32[14,280], index: 3, kind: input, shape index: {}]   ;;  %s4114_s4 = inlined_call_operand.vmem [shape: f32[80,280], index: 4, kind: input, shape index: {}]   ;;  %s4115_s5 = inlined_call_operand.vmem [shape: f32[2,40,14], index: 5, kind: output, shape index: {}]  }
   0x1 LB: > { %s2486_s19 = sadd.s32 4294967295, %s3157_s18   ;;  %p2490_p0 = scmp.ge.s32.totalorder %s3157_s18, 1  ;;  %s3157_s18 = sphi %s3194_s18, %s15_s18  }
   0x2   : > { %p187_p1 = scmp.lt.s32.totalorder %s3157_s18, 3 }
   0x4   : > { %p188_p2 = pnand %p2490_p0, %p187_p1 }
   0x6   : > { %191 = sbr.rel (%p188_p2) target bundleno = 1859 (0x743), region = 40 }
   0xd   : > { %p215_p3 = scmp.lt.s32.totalorder %s2486_s19, 1  ;;  %s3159_s24 = smov 127   ;;  %v265_v11 = vld [vmem:[%s4111_s1] sm:$0xff]  ;;  %vm475_vm0 = vcmask 982016   ;;  %v3161_v12 = vmov 0   ;;  %v305_v13 = vld [vmem:[%s4112_s2 + $0x50] sm:$0xff] }
   0xe   : > { %s3160_s25 = smov 126   ;;  %2759 = vmatprep.mubr.msk.f32.mxu0 %vm475_vm0, %v265_v11  ;;  %3055 = vset.pattern.permute.xlu0 %v3161_v12  ;;  %v306_v14 = vld [vmem:[%s4112_s2 + $0x58] sm:$0xff]  ;;  %v308_v15 = vld [vmem:[%s4112_s2 + $0x68] sm:$0xff]  ;;  %v307_v16 = vld [vmem:[%s4112_s2 + $0x60] sm:$0xff]  ;;  %vm1003_vm1 = vcmask 1045504   ;;  %vm3162_vm2 = vmmov 1  }
   0xf   : > { %s4163_s19 = smov (!%p215_p3, %s2486_s19), 1  ;;  %3056 = vset.pattern.permute.xlu1 %v3161_v12  ;;  %v310_v17 = vld [vmem:[%s4112_s2 + $0x78] sm:$0xff]  ;;  %v309_v18 = vld [vmem:[%s4112_s2 + $0x70] sm:$0xff]  ;;  %v312_v19 = vld [vmem:[%s4112_s2 + $0x88] sm:$0xff]  ;;  %vm972_vm9 = vcmask 113664  }
  0x10   : > { %s3015_s20 = smul.u32 40, %s4163_s19  ;;  %v311_v20 = vld [vmem:[%s4112_s2 + $0x80] sm:$0xff]  ;;  %v314_v21 = vld [vmem:[%s4112_s2 + $0x98] sm:$0xff]  ;;  %v313_v22 = vld [vmem:[%s4112_s2 + $0x90] sm:$0xff] }
  0x11   : > { %v296_v23 = vld [vmem:[%s4112_s2 + $0x8] sm:$0xff]  ;;  %v295_v24 = vld [vmem:[%s4112_s2] sm:$0xff]  ;;  %v298_v25 = vld [vmem:[%s4112_s2 + $0x18] sm:$0xff] }
  0x12   : > { %s219_s23 = scalar_lea.vmem %s4110_s0, %s3015_s20  ;;  %v297_v26 = vld [vmem:[%s4112_s2 + $0x10] sm:$0xff]  ;;  %v300_v27 = vld [vmem:[%s4112_s2 + $0x28] sm:$0xff]  ;;  %v299_v28 = vld [vmem:[%s4112_s2 + $0x20] sm:$0xff]  ;;  %s224_s28 = scalar_lea.vmem %s4115_s5, %s3015_s20 }
  0x13   : > { %v225_v0 = vld [vmem:[%s219_s23] sm:$0xff]  ;;  %v226_v1 = vld [vmem:[%s219_s23 + $0x8] sm:$0xff]  ;;  %v227_v2 = vld [vmem:[%s219_s23 + $0x10] sm:$0xff] }
  0x14   : > { %235 = vrot.lane.b32.xlu0 %v225_v0, %s3159_s24  ;;  %v3035_v3 = vpack.i.bf16 %v227_v2, %v226_v1  ;;  %v228_v4 = vld [vmem:[%s219_s23 + $0x18] sm:$0xff]  ;;  %v3210_v5 = vld [vmem:[%s219_s23 + $0x20] sm:$0xff]  ;;  %v2903_v6 = vpack.c.bf16 %v226_v1, %v225_v0  ;;  %v3045_v9 = vpack.i.bf16 %v226_v1, %v225_v0  ;;  %v301_v30 = vld [vmem:[%s4112_s2 + $0x30] sm:$0xff] }
  0x15   : > { %v3040_v7 = vpack.i.bf16 %v3210_v5, %v228_v4  ;;  %v2907_v8 = vpack.c.bf16 %v228_v4, %v227_v2  ;;  %v3050_v10 = vpack.i.bf16 %v228_v4, %v227_v2  ;;  %v315_v29 = vld [vmem:[%s4112_s2 + $0xa0] sm:$0xff]  ;;  %v302_v32 = vld [vmem:[%s4112_s2 + $0x38] sm:$0xff]  ;;  %v304_v33 = vld [vmem:[%s4112_s2 + $0x48] sm:$0xff] }
  0x16   : > { %2904 = vmatprep.subr.bf16.mxu0 %v2903_v6  ;;  %v303_v31 = vld [vmem:[%s4112_s2 + $0x40] sm:$0xff]  ;;  %v316_v34 = vld [vmem:[%s4112_s2 + $0xa8] sm:$0xff]  ;;  %v318_v35 = vld [vmem:[%s4112_s2 + $0xb8] sm:$0xff] }
  0x17   : > { %3041 = vrot.lane.b32.xlu1 %v3040_v7, %s3159_s24  ;;  %2906 = vmatpush3.bf16.msra.mxu0 %v2903_v6  ;;  %v317_v36 = vld [vmem:[%s4112_s2 + $0xb0] sm:$0xff]  ;;  %v320_v37 = vld [vmem:[%s4112_s2 + $0xc8] sm:$0xff]  ;;  %v319_v38 = vld [vmem:[%s4112_s2 + $0xc0] sm:$0xff] }
  0x18   : > { %3036 = vrot.lane.b32.xlu0 %v3035_v3, %s3159_s24  ;;  %2908 = vmatprep.subr.bf16.mxu0 %v2907_v8  ;;  %v322_v39 = vld [vmem:[%s4112_s2 + $0xd8] sm:$0xff]  ;;  %v321_v42 = vld [vmem:[%s4112_s2 + $0xd0] sm:$0xff]  ;;  %v324_v43 = vld [vmem:[%s4112_s2 + $0xe8] sm:$0xff] }
  0x19   : > { %v323_v50 = vld [vmem:[%s4112_s2 + $0xe0] sm:$0xff]  ;;  %v266_v62 = vld [vmem:[%s4111_s1 + $0x8] sm:$0xff]  ;;  %v267_v63 = vld [vmem:[%s4111_s1 + $0x10] sm:$0xff] }
  0x1a   : > { %v268_v0 = vld [vmem:[%s4111_s1 + $0x18] sm:$0xff]  ;;  %v269_v1 = vld [vmem:[%s4111_s1 + $0x20] sm:$0xff]  ;;  %v270_v2 = vld [vmem:[%s4111_s1 + $0x28] sm:$0xff] }
  0x1b   : > { %3046 = vrot.lane.b32.xlu1 %v3045_v9, %s3160_s25  ;;  %2910 = vmatpush3.bf16.msra.mxu0 %v2907_v8  ;;  %v271_v3 = vld [vmem:[%s4111_s1 + $0x30] sm:$0xff]  ;;  %v272_v4 = vld [vmem:[%s4111_s1 + $0x38] sm:$0xff]  ;;  %v274_v6 = vld [vmem:[%s4111_s1 + $0x48] sm:$0xff] }
  0x1c   : > { %3051 = vrot.lane.b32.xlu0 %v3050_v10, %s3160_s25  ;;  %v275_v7 = vld [vmem:[%s4111_s1 + $0x50] sm:$0xff]  ;;  %v276_v8 = vld [vmem:[%s4111_s1 + $0x58] sm:$0xff]  ;;  %v277_v9 = vld [vmem:[%s4111_s1 + $0x60] sm:$0xff] }
  0x1d   : > { %v278_v10 = vld [vmem:[%s4111_s1 + $0x68] sm:$0xff]  ;;  %v279_v11 = vld [vmem:[%s4111_s1 + $0x70] sm:$0xff]  ;;  %v280_v12 = vld [vmem:[%s4111_s1 + $0x78] sm:$0xff] }
  0x1e   : > { %vm3440_vm3 = vmpackc.low %vm1003_vm1, %vm3162_vm2 }
  0x1f   : > { %258 = vrot.lane.b32.xlu1 %v3210_v5, %s3160_s25 }
  0x20   : > { %377 = vperm.xlu0 %3055, %v305_v13   ;;  %v281_v13 = vld [vmem:[%s4111_s1 + $0x80] sm:$0xff] }
  0x23   : > { %382 = vperm.xlu1 %3056, %v306_v14   ;;  %v282_v14 = vld [vmem:[%s4111_s1 + $0x88] sm:$0xff] }
  0x24   : > { %392 = vperm.xlu0 %3055, %v308_v15   ;;  %v283_v15 = vld [vmem:[%s4111_s1 + $0x90] sm:$0xff] }
  0x27   : > { %387 = vperm.xlu1 %3056, %v307_v16   ;;  %v284_v16 = vld [vmem:[%s4111_s1 + $0x98] sm:$0xff] }
  0x28   : > { %402 = vperm.xlu0 %3055, %v310_v17   ;;  %v285_v17 = vld [vmem:[%s4111_s1 + $0xa0] sm:$0xff] }
  0x2b   : > { %397 = vperm.xlu1 %3056, %v309_v18   ;;  %v286_v18 = vld [vmem:[%s4111_s1 + $0xa8] sm:$0xff] }
  0x2c   : > { %412 = vperm.xlu0 %3055, %v312_v19   ;;  %v287_v19 = vld [vmem:[%s4111_s1 + $0xb0] sm:$0xff] }
  0x2f   : > { %407 = vperm.xlu1 %3056, %v311_v20   ;;  %v288_v20 = vld [vmem:[%s4111_s1 + $0xb8] sm:$0xff] }
  0x30   : > { %422 = vperm.xlu0 %3055, %v314_v21   ;;  %v289_v21 = vld [vmem:[%s4111_s1 + $0xc0] sm:$0xff] }
  0x33   : > { %417 = vperm.xlu1 %3056, %v313_v22   ;;  %v290_v22 = vld [vmem:[%s4111_s1 + $0xc8] sm:$0xff] }
  0x34   : > { %332 = vperm.xlu0 %3055, %v296_v23   ;;  %v291_v23 = vld [vmem:[%s4111_s1 + $0xd0] sm:$0xff] }
  0x37   : > { %327 = vperm.xlu1 %3056, %v295_v24   ;;  %v292_v24 = vld [vmem:[%s4111_s1 + $0xd8] sm:$0xff] }
  0x38   : > { %342 = vperm.xlu0 %3055, %v298_v25   ;;  %v293_v25 = vld [vmem:[%s4111_s1 + $0xe0] sm:$0xff] }
  0x3b   : > { %337 = vperm.xlu1 %3056, %v297_v26   ;;  %v294_v26 = vld [vmem:[%s4111_s1 + $0xe8] sm:$0xff] }
  0x3c   : > { %352 = vperm.xlu0 %3055, %v300_v27   ;;  %v937_v27 = vld [vmem:[%s4113_s3 + $0x8] sm:$0xff] }
  0x3f   : > { %347 = vperm.xlu1 %3056, %v299_v28   ;;  %v940_v28 = vld [vmem:[%s4113_s3 + $0x20] sm:$0x3f] }
  0x40   : > { %427 = vperm.xlu0 %3055, %v315_v29   ;;  %v3431_v29 = vpack.c.bf16 %v940_v28, %v937_v27 }
  0x42   : > { %2933 = vmatprep.subr.msk.bf16.mxu1 %vm3440_vm3, %v3431_v29 }
  0x43   : > { %357 = vperm.xlu1 %3056, %v301_v30   ;;  %v936_v30 = vld [vmem:[%s4113_s3] sm:$0xff] }
  0x44   : > { %367 = vperm.xlu0 %3055, %v303_v31   ;;  %v939_v31 = vld [vmem:[%s4113_s3 + $0x18] sm:$0x3f] }
  0x47   : > { %362 = vperm.xlu1 %3056, %v302_v32  }
  0x48   : > { %372 = vperm.xlu0 %3055, %v304_v33   ;;  %v3444_v33 = vpack.c.bf16 %v939_v31, %v936_v30 }
  0x4a   : > { %2936 = vmatpush1.bf16.msk.msra.mxu1 %vm3440_vm3, %v3444_v33 }
  0x4b   : > { %432 = vperm.xlu1 %3056, %v316_v34   ;;  %v3163_v34 = vmov 0.0  }
  0x4c   : > { %442 = vperm.xlu0 %3055, %v318_v35   ;;  %1077 = vmatprep.mubr.f32.mxu1 %v3163_v34  ;;  %v938_v35 = vld [vmem:[%s4113_s3 + $0x10] sm:$0xff] }
  0x4f   : > { %437 = vperm.xlu1 %3056, %v317_v36   ;;  %v941_v36 = vld [vmem:[%s4113_s3 + $0x28] sm:$0x3f] }
  0x50   : > { %452 = vperm.xlu0 %3055, %v320_v37   ;;  %v3459_v37 = vpack.c.bf16 %v941_v36, %v938_v35 }
  0x52   : > { %2939 = vmatprep.subr.msk.bf16.mxu1 %vm3440_vm3, %v3459_v37 }
  0x53   : > { %447 = vperm.xlu1 %3056, %v319_v38  }
  0x54   : > { %462 = vperm.xlu0 %3055, %v322_v39  }
  0x57   : > { %457 = vperm.xlu1 %3056, %v321_v42  }
  0x58   : > { %472 = vperm.xlu0 %3055, %v324_v43  }
  0x5b   : > { %467 = vperm.xlu1 %3056, %v323_v50  }
  0x86   : > { %v236_v40 = vpop.permute.xlu0 %235 }
  0x87   : > { %v2911_v41 = vpack.c.bf16 %v236_v40, %v3210_v5  ;;  %v273_v5 = vld [vmem:[%s4111_s1 + $0x40] sm:$0xff] }
  0x89   : > { %2912 = vmatprep.subr.bf16.mxu0 %v2911_v41  ;;  %v3042_v44 = vpop.permute.xlu1 %3041 }
  0x8a   : > { %v3037_v45 = vpop.permute.xlu0 %3036  ;;  %2914 = vmatpush3.bf16.msra.mxu0 %v2911_v41  ;;  %v3044_v46 = vunpack.i.h.bf16 %v3042_v44  ;;  %v3043_v47 = vunpack.i.l.bf16 %v3042_v44 }
  0x8b   : > { %v3039_v48 = vunpack.i.h.bf16 %v3037_v45  ;;  %v3038_v49 = vunpack.i.l.bf16 %v3037_v45 }
  0x8c   : > { %v2919_v52 = vpack.c.bf16 %v3044_v46, %v3043_v47 }
  0x8d   : > { %v2915_v51 = vpack.c.bf16 %v3039_v48, %v3038_v49  ;;  %v3047_v53 = vpop.permute.xlu1 %3046 }
  0x8e   : > { %v3049_v54 = vunpack.i.h.bf16 %v3047_v53  ;;  %v3048_v55 = vunpack.i.l.bf16 %v3047_v53  ;;  %v3052_v56 = vpop.permute.xlu0 %3051 }
  0x8f   : > { %2916 = vmatprep.subr.bf16.mxu0 %v2915_v51  ;;  %v3054_v58 = vunpack.i.h.bf16 %v3052_v56  ;;  %v3053_v59 = vunpack.i.l.bf16 %v3052_v56 }
  0x90   : > { %2918 = vmatpush3.bf16.msra.mxu0 %v2915_v51  ;;  %v2923_v57 = vpack.c.bf16 %v3049_v54, %v3048_v55 }
  0x91   : > { %2920 = vmatprep.subr.bf16.mxu0 %v2919_v52  ;;  %v2927_v60 = vpack.c.bf16 %v3054_v58, %v3053_v59  ;;  %v259_v61 = vpop.permute.xlu1 %258 }
  0x94   : > { %2922 = vmatpush3.bf16.msra.mxu0 %v2919_v52 }
  0x95   : > { %2924 = vmatprep.subr.bf16.mxu0 %v2923_v57 }
  0x98   : > { %2926 = vmatpush3.bf16.msra.mxu0 %v2923_v57 }
  0x99   : > { %2928 = vmatprep.subr.bf16.mxu0 %v2927_v60 }
  0x9c   : > { %2930 = vmatpush3.bf16.msra.mxu0 %v2927_v60 }
  0x9d   : > { %2757 = vmatprep.subr.mxu0 %v259_v61 }
  0x9f   : > { %v3470_v39 = vpop.permute.xlu0 %377 }
  0xa0   : > { %2758 = vmatpush3.msra.mxu0 %v259_v61 }
  0xa1   : > { %2760 = vmatmul.mubr.msk.f32.vlgmr.msra.gmra.mrb[0].mxu0 %vm475_vm0, %v266_v62  ;;  %2951 = vmatprep.subr.msk.bf16.mxu0 %vm3440_vm3, %v3459_v37 }
  0xa2   : > { %2762 = vmatprep.mubr.msk.f32.mxu0 %vm475_vm0, %v267_v63  ;;  %2954 = vmatpush3.bf16.msk.msra.mxu0 %vm3440_vm3, %v3459_v37  ;;  %v383_v38 = vpop.permute.xlu1 %382 }
  0xa3   : > { %v3474_v41 = vpop.permute.xlu0 %392 }
  0xa5   : > { %2763 = vmatmul.mubr.msk.f32.gmra.mrb[2].mxu0 %vm475_vm0, %v268_v0 }
  0xa6   : > { %2765 = vmatprep.mubr.msk.f32.mxu0 %vm475_vm0, %v269_v1  ;;  %v3472_v40 = vpop.permute.xlu1 %387 }
  0xa7   : > { %v3478_v43 = vpop.permute.xlu0 %402 }
  0xa9   : > { %2766 = vmatmul.mubr.msk.f32.gmra.mrb[4].mxu0 %vm475_vm0, %v270_v2 }
  0xaa   : > { %2768 = vmatprep.mubr.msk.f32.mxu0 %vm475_vm0, %v271_v3  ;;  %v3476_v42 = vpop.permute.xlu1 %397 }
  0xab   : > { %v3482_v45 = vpop.permute.xlu0 %412 }
  0xad   : > { %2769 = vmatmul.mubr.msk.f32.gmra.mrb[6].mxu0 %vm475_vm0, %v272_v4 }
  0xae   : > { %2771 = vmatprep.mubr.msk.f32.mxu0 %vm475_vm0, %v273_v5  ;;  %v3480_v44 = vpop.permute.xlu1 %407 }
  0xaf   : > { %v3486_v47 = vpop.permute.xlu0 %422 }
  0xb1   : > { %2772 = vmatmul.mubr.msk.f32.gmra.mrb[8].mxu0 %vm475_vm0, %v274_v6 }
  0xb2   : > { %2774 = vmatprep.mubr.msk.f32.mxu0 %vm475_vm0, %v275_v7  ;;  %v3484_v46 = vpop.permute.xlu1 %417 }
  0xb3   : > { %v333_v49 = vpop.permute.xlu0 %332 }
  0xb5   : > { %2775 = vmatmul.mubr.msk.f32.gmra.mrb[10].mxu0 %vm475_vm0, %v276_v8 }
  0xb6   : > { %2777 = vmatprep.mubr.msk.f32.mxu0 %vm475_vm0, %v277_v9  ;;  %v328_v48 = vpop.permute.xlu1 %327 }
  0xb7   : > { %v343_v54 = vpop.permute.xlu0 %342 }
  0xb9   : > { %2778 = vmatmul.mubr.msk.f32.gmra.mrb[12].mxu0 %vm475_vm0, %v278_v10 }
  0xba   : > { %2780 = vmatprep.mubr.msk.f32.mxu0 %vm475_vm0, %v279_v11  ;;  %v338_v50 = vpop.permute.xlu1 %337 }
  0xbb   : > { %v353_v1 = vpop.permute.xlu0 %352 }
  0xbd   : > { %2781 = vmatmul.mubr.msk.f32.gmra.mrb[14].mxu0 %vm475_vm0, %v280_v12 }
  0xbe   : > { %2783 = vmatprep.mubr.msk.f32.mxu0 %vm475_vm0, %v281_v13  ;;  %v348_v62 = vpop.permute.xlu1 %347 }
  0xc1   : > { %2784 = vmatmul.mubr.msk.f32.gmra.mrb[16].mxu0 %vm475_vm0, %v282_v14  ;;  %v3502_v14 = vpop.permute.xlu0 %427 }
  0xc2   : > { %2786 = vmatprep.mubr.msk.f32.mxu0 %vm475_vm0, %v283_v15  ;;  %v358_v8 = vpop.permute.xlu1 %357 }
  0xc5   : > { %2787 = vmatmul.mubr.msk.f32.gmra.mrb[18].mxu0 %vm475_vm0, %v284_v16 }
  0xc6   : > { %2789 = vmatprep.mubr.msk.f32.mxu0 %vm475_vm0, %v285_v17 }
  0xc9   : > { %2790 = vmatmul.mubr.msk.f32.gmra.mrb[20].mxu0 %vm475_vm0, %v286_v18 }
  0xca   : > { %2792 = vmatprep.mubr.msk.f32.mxu0 %vm475_vm0, %v287_v19 }
  0xcd   : > { %2793 = vmatmul.mubr.msk.f32.gmra.mrb[22].mxu0 %vm475_vm0, %v288_v20 }
  0xce   : > { %2795 = vmatprep.mubr.msk.f32.mxu0 %vm475_vm0, %v289_v21 }
  0xd1   : > { %2796 = vmatmul.mubr.msk.f32.gmra.mrb[24].mxu0 %vm475_vm0, %v290_v22  ;;  %v363_v22 = vpop.permute.xlu1 %362 }
  0xd2   : > { %2798 = vmatprep.mubr.msk.f32.mxu0 %vm475_vm0, %v291_v23 }
  0xd5   : > { %2799 = vmatmul.mubr.msk.f32.gmra.mrb[26].mxu0 %vm475_vm0, %v292_v24 }
  0xd6   : > { %2801 = vmatprep.mubr.msk.f32.mxu0 %vm475_vm0, %v293_v25 }
  0xd9   : > { %2802 = vmatmul.mubr.msk.f32.gmra.mrb[28].mxu0 %vm475_vm0, %v294_v26  ;;  %v368_v26 = vpop.permute.xlu0 %367 }
 0x174   : > { %v2761_v51 = vpop.f32.mrb[0].mxu0 }
 0x175   : > { %v3488_v52 = vadd.f32 %v2761_v51, %v333_v49  ;;  %v632_v53 = vpop.f32.mrb[1].mxu0 }
 0x176   : > { %v633_v55 = vadd.f32 %v632_v53, %v328_v48 }
 0x177   : > { %v807_v56 = vmin.f32 %v3488_v52, 0.0  ;;  %vm782_vm5 = vcmp.gt.f32.partialorder %v3488_v52, 0.0 }
 0x178   : > { %v806_v57 = vmin.f32 %v633_v55, 0.0  ;;  %v2764_v58 = vpop.f32.mrb[2].mxu0  ;;  %vm781_vm4 = vcmp.gt.f32.partialorder %v633_v55, 0.0 }
 0x179   : > { %v833_v59 = vmul.f32 1.442695, %v807_v56  ;;  %v3491_v60 = vadd.f32 %v2764_v58, %v343_v54  ;;  %v642_v61 = vpop.f32.mrb[3].mxu0 }
 0x17a   : > { %v831_v63 = vmul.f32 1.442695, %v806_v57  ;;  %v3493_v0 = vadd.f32 %v642_v61, %v338_v50 }
 0x17b   : > { %3057 = vpow2.f32 %v833_v59  ;;  %v809_v2 = vmin.f32 %v3491_v60, 0.0  ;;  %vm784_vm7 = vcmp.gt.f32.partialorder %v3491_v60, 0.0 }
 0x17c   : > { %3059 = vpow2.f32 %v831_v63  ;;  %v808_v3 = vmin.f32 %v3493_v0, 0.0  ;;  %v2767_v4 = vpop.f32.mrb[4].mxu0  ;;  %vm783_vm6 = vcmp.gt.f32.partialorder %v3493_v0, 0.0 }
 0x17d   : > { %v652_v5 = vpop.f32.mrb[5].mxu0  ;;  %v837_v9 = vmul.f32 1.442695, %v809_v2  ;;  %v3499_v10 = vadd.f32 %v2767_v4, %v353_v1 }
 0x17e   : > { %v835_v6 = vmul.f32 1.442695, %v808_v3  ;;  %v3497_v7 = vadd.f32 %v652_v5, %v348_v62  ;;  %v373_v62 = vpop.permute.xlu0 %372 }
 0x17f   : > { %v811_v16 = vmin.f32 %v3499_v10, 0.0  ;;  %vm786_vm10 = vcmp.gt.f32.partialorder %v3499_v10, 0.0 }
 0x180   : > { %3061 = vpow2.f32 %v835_v6  ;;  %v810_v11 = vmin.f32 %v3497_v7, 0.0  ;;  %v2770_v12 = vpop.f32.mrb[6].mxu0  ;;  %vm785_vm8 = vcmp.gt.f32.partialorder %v3497_v7, 0.0 }
 0x181   : > { %v662_v13 = vpop.f32.mrb[7].mxu0  ;;  %3063 = vpow2.f32 %v837_v9  ;;  %v3508_v24 = vadd.f32 %v2770_v12, %v363_v22  ;;  %v841_v27 = vmul.f32 1.442695, %v811_v16 }
 0x182   : > { %v3504_v15 = vadd.f32 %v662_v13, %v358_v8  ;;  %v839_v17 = vmul.f32 1.442695, %v810_v11 }
 0x183   : > { %v813_v51 = vmin.f32 %v3508_v24, 0.0  ;;  %vm788_vm12 = vcmp.gt.f32.partialorder %v3508_v24, 0.0 }
 0x184   : > { %v2773_v18 = vpop.f32.mrb[8].mxu0  ;;  %v812_v23 = vmin.f32 %v3504_v15, 0.0  ;;  %3065 = vpow2.f32 %v839_v17  ;;  %vm787_vm13 = vcmp.gt.f32.partialorder %v3504_v15, 0.0 }
 0x185   : > { %v3058_v19 = vpop.eup %3057  ;;  %v672_v20 = vpop.f32.mrb[9].mxu0  ;;  %3067 = vpow2.f32 %v841_v27  ;;  %v845_v2 = vmul.f32 1.442695, %v813_v51  ;;  %v3528_v3 = vadd.f32 %v2773_v18, %v373_v62 }
 0x186   : > { %v3060_v21 = vpop.eup %3059  ;;  %v2524_v36 = vadd.f32 -1.0, %v3058_v19  ;;  %v843_v49 = vmul.f32 1.442695, %v812_v23  ;;  %v3516_v53 = vadd.f32 %v672_v20, %v368_v26  ;;  %v433_v27 = vpop.permute.xlu1 %432 }
 0x187   : > { %v2523_v25 = vadd.f32 -1.0, %v3060_v21  ;;  %v815_v13 = vmin.f32 %v3528_v3, 0.0 }
 0x188   : > { %v2776_v28 = vpop.f32.mrb[10].mxu0  ;;  %3069 = vpow2.f32 %v843_v49  ;;  %v814_v4 = vmin.f32 %v3516_v53, 0.0  ;;  %vm789_vm0 = vcmp.gt.f32.partialorder %v3516_v53, 0.0 }
 0x189   : > { %v3510_v30 = vadd.f32 %v2776_v28, %v383_v38  ;;  %v682_v31 = vpop.f32.mrb[11].mxu0  ;;  %v906_v35 = vsel %vm781_vm4, %v633_v55, %v2523_v25  ;;  %v849_v25 = vmul.f32 1.442695, %v815_v13  ;;  %vm790_vm4 = vcmp.gt.f32.partialorder %v3528_v3, 0.0 }
 0x18a   : > { %v3062_v48 = vpop.eup %3061  ;;  %v3513_v50 = vadd.f32 %v682_v31, %v3470_v39  ;;  %1583 = vxpose.xlu1.b32.start [1/10] (short) (narrow) %v906_v35, 16  ;;  %v907_v39 = vsel %vm782_vm5, %v3488_v52, %v2524_v36  ;;  %v847_v16 = vmul.f32 1.442695, %v814_v4 }
 0x18b   : > { %v817_v54 = vmin.f32 %v3510_v30, 0.0  ;;  %v2525_v59 = vadd.f32 -1.0, %v3062_v48  ;;  %v3064_v61 = vpop.eup %3063  ;;  %vm792_vm14 = vcmp.gt.f32.partialorder %v3510_v30, 0.0 }
 0x18c   : > { %v816_v38 = vmin.f32 %v3513_v50, 0.0  ;;  %v2779_v56 = vpop.f32.mrb[12].mxu0  ;;  %vm791_vm11 = vcmp.gt.f32.partialorder %v3513_v50, 0.0 }
 0x18d   : > { %v853_v55 = vmul.f32 1.442695, %v817_v54  ;;  %v3522_v57 = vadd.f32 %v2779_v56, %v3474_v41  ;;  %v692_v58 = vpop.f32.mrb[13].mxu0  ;;  %v908_v8 = vsel %vm783_vm6, %v3493_v0, %v2525_v59 }
 0x18e   : > { %v851_v63 = vmul.f32 1.442695, %v816_v38  ;;  %v3526_v1 = vadd.f32 %v692_v58, %v3472_v40  ;;  %1584 = vxpose.xlu1.b32.cont [2/10] (short) (narrow) %v907_v39, 16  ;;  %v2526_v40 = vadd.f32 -1.0, %v3064_v61  ;;  %v3066_v9 = vpop.eup %3065 }
 0x18f   : > { %3071 = vpow2.f32 %v853_v55  ;;  %v819_v41 = vmin.f32 %v3522_v57, 0.0  ;;  %v3068_v22 = vpop.eup %3067  ;;  %vm794_vm2 = vcmp.gt.f32.partialorder %v3522_v57, 0.0 }
 0x190   : > { %3073 = vpow2.f32 %v851_v63  ;;  %v818_v52 = vmin.f32 %v3526_v1, 0.0  ;;  %v2782_v5 = vpop.f32.mrb[14].mxu0  ;;  %v909_v21 = vsel %vm784_vm7, %v3491_v60, %v2526_v40  ;;  %v2528_v48 = vadd.f32 -1.0, %v3068_v22  ;;  %v438_v63 = vpop.permute.xlu1 %437 }
 0x191   : > { %v702_v6 = vpop.f32.mrb[15].mxu0  ;;  %3075 = vpow2.f32 %v845_v2  ;;  %v3540_v17 = vadd.f32 %v2782_v5, %v3478_v43  ;;  %v857_v18 = vmul.f32 1.442695, %v819_v41  ;;  %vm793_vm15 = vcmp.gt.f32.partialorder %v3526_v1, 0.0 }
 0x192   : > { %v855_v11 = vmul.f32 1.442695, %v818_v52  ;;  %v3536_v12 = vadd.f32 %v702_v6, %v3476_v42  ;;  %1585 = vxpose.xlu1.b32.cont [3/10] (short) (narrow) %v908_v8, 16  ;;  %v2527_v42 = vadd.f32 -1.0, %v3066_v9  ;;  %v3070_v26 = vpop.eup %3069  ;;  %v911_v59 = vsel %vm786_vm10, %v3499_v10, %v2528_v48 }
 0x193   : > { %v821_v43 = vmin.f32 %v3540_v17, 0.0  ;;  %v2529_v55 = vadd.f32 -1.0, %v3070_v26  ;;  %vm796_vm6 = vcmp.gt.f32.partialorder %v3540_v17, 0.0 }
 0x194   : > { %3077 = vpow2.f32 %v855_v11  ;;  %v820_v0 = vmin.f32 %v3536_v12, 0.0  ;;  %v2785_v19 = vpop.f32.mrb[16].mxu0  ;;  %v910_v60 = vsel %vm785_vm8, %v3497_v7, %v2527_v42  ;;  %vm795_vm5 = vcmp.gt.f32.partialorder %v3536_v12, 0.0 }
 0x195   : > { %v712_v20 = vpop.f32.mrb[17].mxu0  ;;  %3079 = vpow2.f32 %v847_v16  ;;  %v861_v54 = vmul.f32 1.442695, %v821_v43  ;;  %v912_v6 = vsel %vm787_vm13, %v3504_v15, %v2529_v55 }
 0x196   : > { %v3546_v23 = vadd.f32 %v712_v20, %v3480_v44  ;;  %1586 = vxpose.xlu1.b32.cont [4/10] (short) (narrow) %v909_v21, 16  ;;  %3081 = vpow2.f32 %v857_v18  ;;  %v859_v28 = vmul.f32 1.442695, %v820_v0  ;;  %v3552_v44 = vadd.f32 %v2785_v19, %v3482_v45  ;;  %v448_v20 = vpop.permute.xlu1 %447 }
 0x197   : > { %3083 = vpow2.f32 %v849_v25 }
 0x198   : > { %v2788_v31 = vpop.f32.mrb[18].mxu0  ;;  %v822_v51 = vmin.f32 %v3546_v23, 0.0  ;;  %3085 = vpow2.f32 %v859_v28  ;;  %v823_v2 = vmin.f32 %v3552_v44, 0.0  ;;  %vm797_vm10 = vcmp.gt.f32.partialorder %v3546_v23, 0.0 }
 0x199   : > { %v3072_v35 = vpop.eup %3071  ;;  %v722_v36 = vpop.f32.mrb[19].mxu0  ;;  %3087 = vpow2.f32 %v861_v54  ;;  %vm798_vm13 = vcmp.gt.f32.partialorder %v3552_v44, 0.0 }
 0x19a   : > { %v3074_v49 = vpop.eup %3073  ;;  %1587 = vxpose.xlu1.b32.cont [5/10] (short) (narrow) %v910_v60, 16  ;;  %v2534_v61 = vadd.f32 -1.0, %v3072_v35  ;;  %v863_v4 = vmul.f32 1.442695, %v822_v51  ;;  %v3572_v10 = vadd.f32 %v722_v36, %v3484_v46  ;;  %v865_v18 = vmul.f32 1.442695, %v823_v2 }
 0x19b   : > { %v2533_v38 = vadd.f32 -1.0, %v3074_v49  ;;  %v3076_v7 = vpop.eup %3075 }
 0x19c   : > { %v2791_v56 = vpop.f32.mrb[20].mxu0  ;;  %v2530_v8 = vadd.f32 -1.0, %v3076_v7  ;;  %v3588_v11 = vsel %vm792_vm14, %v3510_v30, %v2534_v61  ;;  %3089 = vpow2.f32 %v863_v4  ;;  %v824_v15 = vmin.f32 %v3572_v10, 0.0 }
 0x19d   : > { %v3557_v58 = vadd.f32 %v2791_v56, %v433_v27  ;;  %v732_v39 = vpop.f32.mrb[21].mxu0  ;;  %v3560_v45 = vsel %vm791_vm11, %v3513_v50, %v2533_v38 }
 0x19e   : > { %v3078_v62 = vpop.eup %3077  ;;  %v3566_v41 = vadd.f32 %v732_v39, %v3502_v14  ;;  %2550 = vmatmul.mubr.msk.f32.vlgmr.msra.gmra.mrb[0].mxu1 %vm972_vm9, %v3560_v45  ;;  %1588 = vxpose.xlu1.b32.cont [6/10] (short) (narrow) %v911_v59, 16  ;;  %v443_v14 = vpop.permute.xlu0 %442  ;;  %v913_v22 = vsel %vm788_vm12, %v3508_v24, %v2530_v8  ;;  %v867_v48 = vmul.f32 1.442695, %v824_v15 }
 0x19f   : > { %v827_v50 = vmin.f32 %v3557_v58, 0.0  ;;  %2942 = vmatpush3.bf16.msk.msra.mxu1 %vm3440_vm3, %v3459_v37  ;;  %1083 = vmatprep.mubr.f32.mxu1 %v3163_v34  ;;  %v3080_v46 = vpop.eup %3079  ;;  %v2535_v13 = vadd.f32 -1.0, %v3078_v62  ;;  %v458_v39 = vpop.permute.xlu1 %457  ;;  %vm802_vm7 = vcmp.gt.f32.partialorder %v3557_v58, 0.0 }
 0x1a0   : > { %v826_v52 = vmin.f32 %v3566_v41, 0.0  ;;  %v2794_v5 = vpop.f32.mrb[22].mxu0  ;;  %2945 = vmatprep.subr.msk.bf16.mxu1 %vm3440_vm3, %v3431_v29  ;;  %v3082_v16 = vpop.eup %3081  ;;  %v3595_v29 = vadd.f32 %v2788_v31, %v3486_v47  ;;  %v2531_v28 = vadd.f32 -1.0, %v3080_v46  ;;  %vm801_vm8 = vcmp.gt.f32.partialorder %v3566_v41, 0.0 }
 0x1a1   : > { %v873_v40 = vmul.f32 1.442695, %v827_v50  ;;  %v3585_v9 = vadd.f32 %v2794_v5, %v443_v14  ;;  %v742_v37 = vpop.f32.mrb[23].mxu0  ;;  %v3084_v47 = vpop.eup %3083  ;;  %v3606_v26 = vsel %vm793_vm15, %v3526_v1, %v2535_v13  ;;  %v2536_v27 = vadd.f32 -1.0, %v3082_v16 }
 0x1a2   : > { %v871_v0 = vmul.f32 1.442695, %v826_v52  ;;  %v3590_v19 = vadd.f32 %v742_v37, %v438_v63  ;;  %2551 = vmatmul.mubr.msk.f32.gmra.mrb[2].mxu1 %vm972_vm9, %v3588_v11  ;;  %1589 = vxpose.xlu1.b32.cont [7/10] (short) (narrow) %v912_v6, 16  ;;  %v3086_v31 = vpop.eup %3085  ;;  %v453_v60 = vpop.permute.xlu0 %452  ;;  %v825_v24 = vmin.f32 %v3595_v29, 0.0  ;;  %v914_v56 = vsel %vm789_vm0, %v3516_v53, %v2531_v28 }
 0x1a3   : > { %3091 = vpow2.f32 %v873_v40  ;;  %v829_v30 = vmin.f32 %v3585_v9, 0.0  ;;  %1089 = vmatprep.mubr.f32.mxu1 %v3163_v34  ;;  %v3088_v51 = vpop.eup %3087  ;;  %v3618_v38 = vsel %vm794_vm2, %v3522_v57, %v2536_v27  ;;  %v2537_v55 = vadd.f32 -1.0, %v3086_v31  ;;  %v468_v37 = vpop.permute.xlu1 %467 }
 0x1a4   : > { %3093 = vpow2.f32 %v871_v0  ;;  %v828_v21 = vmin.f32 %v3590_v19, 0.0  ;;  %v2797_v42 = vpop.f32.mrb[24].mxu0  ;;  %v2532_v7 = vadd.f32 -1.0, %v3084_v47  ;;  %v869_v61 = vmul.f32 1.442695, %v825_v24 }
 0x1a5   : > { %v877_v25 = vmul.f32 1.442695, %v829_v30  ;;  %v752_v43 = vpop.f32.mrb[25].mxu0  ;;  %3095 = vpow2.f32 %v865_v18  ;;  %v758_v57 = vadd.f32 %v2797_v42, %v453_v60  ;;  %v2538_v63 = vadd.f32 -1.0, %v3088_v51 }
 0x1a6   : > { %v875_v35 = vmul.f32 1.442695, %v828_v21  ;;  %v3608_v36 = vadd.f32 %v752_v43, %v448_v20  ;;  %2552 = vmatmul.mubr.msk.f32.gmra.mrb[4].mxu1 %vm972_vm9, %v3606_v26  ;;  %1590 = vxpose.xlu1.b32.cont [8/10] (short) (narrow) %v913_v22, 16  ;;  %v3090_v62 = vpop.eup %3089  ;;  %v463_v4 = vpop.permute.xlu0 %462  ;;  %v3627_v52 = vsel %vm795_vm5, %v3536_v12, %v2537_v55  ;;  %v915_v5 = vsel %vm790_vm4, %v3528_v3, %v2532_v7 }
 0x1a7   : > { %3097 = vpow2.f32 %v877_v25  ;;  %1095 = vmatprep.mubr.f32.mxu1 %v3163_v34  ;;  %v3637_v12 = vsel %vm796_vm6, %v3540_v17, %v2538_v63  ;;  %v2539_v0 = vadd.f32 -1.0, %v3090_v62  ;;  %vm804_vm11 = vcmp.gt.f32.partialorder %v3585_v9, 0.0  ;;  %v3754_v62 = vld [vmem:[%s4114_s4 + $0x30] sm:$0xff] }
 0x1a8   : > { %3099 = vpow2.f32 %v875_v35  ;;  %v830_v1 = vmin.f32 %v3608_v36, 0.0  ;;  %v2800_v49 = vpop.f32.mrb[26].mxu0  ;;  %vm803_vm12 = vcmp.gt.f32.partialorder %v3590_v19, 0.0  ;;  %vm805_vm14 = vcmp.gt.f32.partialorder %v3608_v36, 0.0  ;;  %v3769_v63 = vld [vmem:[%s4114_s4 + $0x50] sm:$0xff] }
 0x1a9   : > { %v762_v54 = vpop.f32.mrb[27].mxu0  ;;  %3101 = vpow2.f32 %v867_v48  ;;  %v768_v3 = vadd.f32 %v2800_v49, %v463_v4  ;;  %v922_v42 = vsel %vm797_vm10, %v3546_v23, %v2539_v0  ;;  %vm799_vm15 = vcmp.gt.f32.partialorder %v3572_v10, 0.0 }
 0x1aa   : > { %v879_v59 = vmul.f32 1.442695, %v830_v1  ;;  %2553 = vmatmul.mubr.msk.f32.gmra.mrb[6].mxu1 %vm972_vm9, %v3618_v38  ;;  %1591 = vxpose.xlu1.b32.cont [9/10] (short) (narrow) %v914_v56, 16  ;;  %v763_v50 = vadd.f32 %v762_v54, %v458_v39  ;;  %v473_v17 = vpop.permute.xlu0 %472  ;;  %vm800_vm0 = vcmp.gt.f32.partialorder %v3595_v29, 0.0  ;;  %vm1780_vm2 = vcmask 195584  }
 0x1ab   : > { %1101 = vmatprep.mubr.f32.mxu1 %v3163_v34  ;;  %vm1788_vm4 = vcmask 193536  }
 0x1ac   : > { %3103 = vpow2.f32 %v879_v59  ;;  %v2803_v53 = vpop.f32.mrb[28].mxu0 }
 0x1ad   : > { %v3092_v2 = vpop.eup %3091  ;;  %v772_v14 = vpop.f32.mrb[29].mxu0  ;;  %3105 = vpow2.f32 %v869_v61 }
 0x1ae   : > { %v3094_v6 = vpop.eup %3093  ;;  %v2544_v8 = vadd.f32 -1.0, %v3092_v2  ;;  %2554 = vmatmul.mubr.msk.f32.gmra.mrb[8].mxu1 %vm972_vm9, %v3627_v52  ;;  %1592 = vxpose.xlu1.b32.end [10/10] (short) (narrow) %v915_v5, 16  ;;  %3107 = vtanh.f32 %v758_v57  ;;  %v773_v16 = vadd.f32 %v772_v14, %v468_v37  ;;  %v3759_v57 = vld [vmem:[%s4114_s4 + $0x48] sm:$0xff]  ;;  %v3778_v37 = vld [vmem:[%s4114_s4 + $0x60] sm:$0xff] }
 0x1af   : > { %1107 = vmatprep.mubr.f32.mxu1 %v3163_v34  ;;  %v2543_v46 = vadd.f32 -1.0, %v3094_v6  ;;  %v3096_v40 = vpop.eup %3095  ;;  %3109 = vtanh.f32 %v763_v50 }
 0x1b0   : > { %v3643_v30 = vsel %vm802_vm7, %v3557_v58, %v2544_v8  ;;  %3111 = vtanh.f32 %v768_v3  ;;  %v778_v58 = vadd.f32 %v2803_v53, %v473_v17  ;;  %v2540_v47 = vadd.f32 -1.0, %v3096_v40  ;;  %v3764_v53 = vld [vmem:[%s4114_s4 + $0x38] sm:$0xff] }
 0x1b1   : > { %v3098_v13 = vpop.eup %3097  ;;  %v3640_v18 = vsel %vm801_vm8, %v3566_v41, %v2543_v46  ;;  %3113 = vtanh.f32 %v773_v16  ;;  %v3783_v3 = vld [vmem:[%s4114_s4 + $0x78] sm:$0xff] }
 0x1b2   : > { %v3100_v15 = vpop.eup %3099  ;;  %2555 = vmatmul.mubr.msk.f32.gmra.mrb[10].mxu1 %vm972_vm9, %v3637_v12  ;;  %2827 = vmatprep.mubr.msk.f32.mxu0 %vm972_vm9, %v3640_v18  ;;  %v2546_v20 = vadd.f32 -1.0, %v3098_v13  ;;  %3115 = vtanh.f32 %v778_v58  ;;  %v3793_v13 = vld [vmem:[%s4114_s4 + $0x80] sm:$0xff] }
 0x1b3   : > { %2828 = vmatmul.mubr.msk.f32.vlgmr.msra.gmra.mrb[30].mxu0 %vm972_vm9, %v3643_v30  ;;  %1113 = vmatprep.mubr.f32.mxu1 %v3163_v34  ;;  %v2545_v41 = vadd.f32 -1.0, %v3100_v15  ;;  %v3102_v21 = vpop.eup %3101 }
 0x1b4   : > { %v929_v43 = vsel %vm804_vm11, %v3585_v9, %v2546_v20  ;;  %v2541_v31 = vadd.f32 -1.0, %v3102_v21 }
 0x1b5   : > { %v928_v22 = vsel %vm803_vm12, %v3590_v19, %v2545_v41  ;;  %v923_v19 = vsel %vm798_vm13, %v3552_v44, %v2540_v47 }
 0x1b6   : > { %v3104_v25 = vpop.eup %3103  ;;  %2556 = vmatmul.mubr.msk.f32.gmra.mrb[12].mxu1 %vm972_vm9, %v922_v42  ;;  %2830 = vmatprep.mubr.msk.f32.mxu0 %vm972_vm9, %v928_v22  ;;  %v924_v60 = vsel %vm799_vm15, %v3572_v10, %v2541_v31  ;;  %v3730_v10 = vld [vmem:[%s4114_s4] sm:$0xff] }
 0x1b7   : > { %2831 = vmatmul.mubr.msk.f32.gmra.mrb[32].mxu0 %vm972_vm9, %v929_v43  ;;  %1119 = vmatprep.mubr.f32.mxu1 %v3163_v34  ;;  %v2547_v27 = vadd.f32 -1.0, %v3104_v25  ;;  %v3106_v23 = vpop.eup %3105  ;;  %v3808_v25 = vld [vmem:[%s4114_s4 + $0x90] sm:$0xff] }
 0x1b8   : > { %v3108_v35 = vpop.eup %3107  ;;  %v2542_v44 = vadd.f32 -1.0, %v3106_v23  ;;  %v3820_v23 = vld [vmem:[%s4114_s4 + $0x98] sm:$0xff] }
 0x1b9   : > { %v930_v28 = vsel %vm805_vm14, %v3608_v36, %v2547_v27  ;;  %v3110_v9 = vpop.eup %3109  ;;  %v3815_v27 = vld [vmem:[%s4114_s4 + $0xa8] sm:$0xff] }
 0x1ba   : > { %2557 = vmatmul.mubr.msk.f32.gmra.mrb[14].mxu1 %vm972_vm9, %v923_v19  ;;  %2833 = vmatprep.mubr.msk.f32.mxu0 %vm972_vm9, %v930_v28  ;;  %v3112_v24 = vpop.eup %3111  ;;  %v925_v48 = vsel %vm800_vm0, %v3595_v29, %v2542_v44  ;;  %v3740_v29 = vld [vmem:[%s4114_s4 + $0x8] sm:$0xff] }
 0x1bb   : > { %2834 = vmatmul.mubr.msk.f32.gmra.mrb[34].mxu0 %vm972_vm9, %v3108_v35  ;;  %1125 = vmatprep.mubr.f32.mxu1 %v3163_v34  ;;  %v3114_v36 = vpop.eup %3113 }
 0x1bc   : > { %2836 = vmatprep.mubr.msk.f32.mxu0 %vm972_vm9, %v3110_v9  ;;  %v3116_v1 = vpop.eup %3115 }
 0x1be   : > { %2558 = vmatmul.mubr.msk.f32.gmra.mrb[16].mxu1 %vm972_vm9, %v924_v60 }
 0x1bf   : > { %2837 = vmatmul.mubr.msk.f32.gmra.mrb[36].mxu0 %vm972_vm9, %v3112_v24  ;;  %1131 = vmatprep.mubr.f32.mxu1 %v3163_v34 }
 0x1c0   : > { %2839 = vmatprep.mubr.msk.f32.mxu0 %vm972_vm9, %v3114_v36 }
 0x1c2   : > { %2559 = vmatmul.mubr.msk.f32.gmra.mrb[18].mxu1 %vm972_vm9, %v925_v48 }
 0x1c3   : > { %2808 = vmatprep.mubr.msk.f32.mxu1 %vm972_vm9, %v3560_v45  ;;  %2840 = vmatmul.mubr.msk.f32.gmra.mrb[38].mxu0 %vm972_vm9, %v3116_v1 }
 0x1c6   : > { %2809 = vmatmul.mubr.msk.f32.vlgmr.msra.gmra.mrb[20].mxu1 %vm972_vm9, %v3588_v11  ;;  %v3735_v11 = vld [vmem:[%s4114_s4 + $0x18] sm:$0xff] }
 0x1c7   : > { %2811 = vmatprep.mubr.msk.f32.mxu1 %vm972_vm9, %v3606_v26  ;;  %2948 = vmatpush1.bf16.msk.msra.mxu1 %vm3440_vm3, %v3444_v33  ;;  %vm1615_vm3 = vcmask 654336   ;;  %v3745_v26 = vld [vmem:[%s4114_s4 + $0x20] sm:$0xff] }
 0x1ca   : > { %2812 = vmatmul.mubr.msk.f32.gmra.mrb[22].mxu1 %vm972_vm9, %v3618_v38 }
 0x1cb   : > { %2814 = vmatprep.mubr.msk.f32.mxu1 %vm972_vm9, %v3627_v52 }
 0x1ce   : > { %2815 = vmatmul.mubr.msk.f32.gmra.mrb[24].mxu1 %vm972_vm9, %v3637_v12  ;;  %v3788_v12 = vld [vmem:[%s4114_s4 + $0x68] sm:$0xff] }
 0x1cf   : > { %2817 = vmatprep.mubr.msk.f32.mxu1 %vm972_vm9, %v922_v42 }
 0x1d2   : > { %2818 = vmatmul.mubr.msk.f32.gmra.mrb[26].mxu1 %vm972_vm9, %v923_v19  ;;  %v3825_v19 = vld [vmem:[%s4114_s4 + $0xb0] sm:$0xff] }
 0x1d3   : > { %2820 = vmatprep.mubr.msk.f32.mxu1 %vm972_vm9, %v924_v60 }
 0x1d6   : > { %2821 = vmatmul.mubr.msk.f32.gmra.mrb[28].mxu1 %vm972_vm9, %v925_v48 }
 0x1d7   : > { %1377 = vmatprep.mubr.f32.mxu1 %v3163_v34 }
 0x1da   : > { %2573 = vmatmul.mubr.msk.f32.vlgmr.msra.gmra.mrb[30].mxu1 %vm972_vm9, %v3640_v18 }
 0x1db   : > { %1383 = vmatprep.mubr.f32.mxu1 %v3163_v34 }
 0x1de   : > { %2574 = vmatmul.mubr.msk.f32.gmra.mrb[32].mxu1 %vm972_vm9, %v3643_v30 }
 0x1df   : > { %1389 = vmatprep.mubr.f32.mxu1 %v3163_v34 }
 0x1e2   : > { %2575 = vmatmul.mubr.msk.f32.gmra.mrb[34].mxu1 %vm972_vm9, %v928_v22 }
 0x1e3   : > { %1395 = vmatprep.mubr.f32.mxu1 %v3163_v34 }
 0x1e6   : > { %2576 = vmatmul.mubr.msk.f32.gmra.mrb[36].mxu1 %vm972_vm9, %v929_v43 }
 0x1e7   : > { %1401 = vmatprep.mubr.f32.mxu1 %v3163_v34 }
 0x1ea   : > { %2577 = vmatmul.mubr.msk.f32.gmra.mrb[38].mxu1 %vm972_vm9, %v930_v28 }
 0x1eb   : > { %1407 = vmatprep.mubr.f32.mxu1 %v3163_v34 }
 0x1ee   : > { %2578 = vmatmul.mubr.msk.f32.gmra.mrb[40].mxu1 %vm972_vm9, %v3108_v35 }
 0x1ef   : > { %1413 = vmatprep.mubr.f32.mxu1 %v3163_v34 }
 0x1f2   : > { %2579 = vmatmul.mubr.msk.f32.gmra.mrb[42].mxu1 %vm972_vm9, %v3110_v9 }
 0x1f3   : > { %1419 = vmatprep.mubr.f32.mxu1 %v3163_v34 }
 0x1f6   : > { %2580 = vmatmul.mubr.msk.f32.gmra.mrb[44].mxu1 %vm972_vm9, %v3112_v24 }
 0x1f7   : > { %1425 = vmatprep.mubr.f32.mxu1 %v3163_v34 }
 0x1fa   : > { %2581 = vmatmul.mubr.msk.f32.gmra.mrb[46].mxu1 %vm972_vm9, %v3114_v36 }
 0x1fb   : > { %1431 = vmatprep.mubr.f32.mxu1 %v3163_v34 }
 0x1fe   : > { %2582 = vmatmul.mubr.msk.f32.gmra.mrb[48].mxu1 %vm972_vm9, %v3116_v1 }
 0x1ff   : > { %1686 = vmatprep.mubr.f32.mxu1 %v3163_v34 }
 0x20a   : > { %v3723_v32 = vpop.trf.xlu1 }
 0x20b   : > { %2862 = vmatprep.mubr.msk.f32.mxu0 %vm1615_vm3, %v3723_v32 }
 0x271   : > { %v1079_v33 = vpop.f32.mrb[0].mxu1 }
 0x272   : > { %v1081_v45 = vpop.f32.mrb[1].mxu1  ;;  %v1253_v51 = vmul.f32 %v1079_v33, %v3730_v10 }
 0x273   : > { %v1254_v56 = vmul.f32 %v1081_v45, %v3740_v29 }
 0x275   : > { %v1085_v49 = vpop.f32.mrb[2].mxu1 }
 0x276   : > { %v1256_v54 = vmul.f32 %v1085_v49, %v3735_v11  ;;  %v1087_v38 = vpop.f32.mrb[3].mxu1 }
 0x277   : > { %v1257_v55 = vmul.f32 %v1087_v38, %v3745_v26  ;;  %v3847_v38 = vld [vmem:[%s4114_s4 + $0xd8] sm:$0xff] }
 0x278   : > { %v2957_v7 = vpack.c.bf16 %v1256_v54, %v1253_v51  ;;  %v3840_v51 = vld [vmem:[%s4114_s4 + $0xc0] sm:$0xff]  ;;  %4127 = vst [vmem:[#allocation9_spill] sm:$0xff] %v3847_v38 }
 0x279   : > { %v2955_v39 = vpack.c.bf16 %v1257_v55, %v1254_v56  ;;  %v1091_v59 = vpop.f32.mrb[4].mxu1  ;;  %v3852_v56 = vld [vmem:[%s4114_s4 + $0xc8] sm:$0xff]  ;;  %v3857_v55 = vld [vmem:[%s4114_s4 + $0xe0] sm:$0xff] }
 0x27a   : > { %v1093_v61 = vpop.f32.mrb[5].mxu1  ;;  %v1259_v4 = vmul.f32 %v1091_v59, %v3754_v62 }
 0x27b   : > { %2956 = vmatprep.subr.bf16.mxu1 %v2955_v39  ;;  %v1260_v52 = vmul.f32 %v1093_v61, %v3764_v53 }
 0x27c   : > { %2958 = vmatpush1.bf16.msra.mxu1 %v2957_v7 }
 0x27d   : > { %v1097_v2 = vpop.f32.mrb[6].mxu1 }
 0x27e   : > { %v1262_v50 = vmul.f32 %v1097_v2, %v3759_v57  ;;  %v1099_v14 = vpop.f32.mrb[7].mxu1 }
 0x27f   : > { %v1263_v5 = vmul.f32 %v1099_v14, %v3769_v63 }
 0x280   : > { %v2961_v6 = vpack.c.bf16 %v1262_v50, %v1259_v4 }
 0x281   : > { %v2959_v8 = vpack.c.bf16 %v1263_v5, %v1260_v52  ;;  %v1103_v46 = vpop.f32.mrb[8].mxu1  ;;  %v3870_v5 = vld [vmem:[%s4114_s4 + $0x28] sm:$0xff] }
 0x282   : > { %v1105_v40 = vpop.f32.mrb[9].mxu1  ;;  %v1265_v18 = vmul.f32 %v1103_v46, %v3778_v37  ;;  %v3875_v46 = vld [vmem:[%s4114_s4 + $0x10] sm:$0xff] }
 0x283   : > { %2960 = vmatprep.subr.bf16.mxu1 %v2959_v8  ;;  %v1266_v20 = vmul.f32 %v1105_v40, %v3788_v12 }
 0x284   : > { %2962 = vmatpush1.bf16.msra.mxu1 %v2961_v6 }
 0x285   : > { %v1109_v16 = vpop.f32.mrb[10].mxu1 }
 0x286   : > { %v1268_v0 = vmul.f32 %v1109_v16, %v3783_v3  ;;  %v1111_v15 = vpop.f32.mrb[11].mxu1  ;;  %v3797_v30 = vpop.f32.mrb[30].mxu0 }
 0x287   : > { %4120 = vst [vmem:[#allocation2_spill] sm:$0xff] %v3797_v30  ;;  %v1269_v17 = vmul.f32 %v1111_v15, %v3793_v13  ;;  %v3801_v41 = vpop.f32.mrb[31].mxu0 }
 0x288   : > { %v2965_v58 = vpack.c.bf16 %v1268_v0, %v1265_v18  ;;  %v3882_v0 = vld [vmem:[%s4114_s4 + $0x58] sm:$0xff] }
 0x289   : > { %v2963_v21 = vpack.c.bf16 %v1269_v17, %v1266_v20  ;;  %v1115_v42 = vpop.f32.mrb[12].mxu1  ;;  %v3887_v17 = vld [vmem:[%s4114_s4 + $0x40] sm:$0xff] }
 0x28a   : > { %v1117_v22 = vpop.f32.mrb[13].mxu1  ;;  %v3803_v47 = vpop.f32.mrb[32].mxu0  ;;  %v1271_v31 = vmul.f32 %v1115_v42, %v3808_v25 }
 0x28b   : > { %4121 = vst [vmem:[#allocation3_spill] sm:$0xff] %v3803_v47  ;;  %v3810_v43 = vpop.f32.mrb[33].mxu0  ;;  %2964 = vmatprep.subr.bf16.mxu1 %v2963_v21  ;;  %v1272_v44 = vmul.f32 %v1117_v22, %v3820_v23  ;;  %v1600_v22 = vpop.trf.xlu1 }
 0x28c   : > { %4122 = vst [vmem:[#allocation4_spill] sm:$0xff] %v3810_v43  ;;  %2966 = vmatpush1.bf16.msra.mxu1 %v2965_v58 }
 0x28d   : > { %v1121_v28 = vpop.f32.mrb[14].mxu1 }
 0x28e   : > { %v1274_v35 = vmul.f32 %v1121_v28, %v3815_v27  ;;  %v1123_v9 = vpop.f32.mrb[15].mxu1  ;;  %v3829_v60 = vpop.f32.mrb[34].mxu0  ;;  %v3897_v28 = vld [vmem:[%s4114_s4 + $0x88] sm:$0xff] }
 0x28f   : > { %4123 = vst [vmem:[#allocation5_spill] sm:$0xff] %v3829_v60  ;;  %v1275_v24 = vmul.f32 %v1123_v9, %v3825_v19  ;;  %v3833_v36 = vpop.f32.mrb[35].mxu0  ;;  %v3902_v9 = vld [vmem:[%s4114_s4 + $0x70] sm:$0xff] }
 0x290   : > { %4124 = vst [vmem:[#allocation6_spill] sm:$0xff] %v3833_v36  ;;  %v2969_v48 = vpack.c.bf16 %v1274_v35, %v1271_v31 }
 0x291   : > { %v2967_v1 = vpack.c.bf16 %v1275_v24, %v1272_v44  ;;  %v1127_v33 = vpop.f32.mrb[16].mxu1 }
 0x292   : > { %v1129_v45 = vpop.f32.mrb[17].mxu1  ;;  %v3835_v49 = vpop.f32.mrb[36].mxu0  ;;  %v1277_v39 = vmul.f32 %v1127_v33, %v3840_v51  ;;  %v3916_v33 = vld [vmem:[%s4114_s4 + $0xa0] sm:$0xff] }
 0x293   : > { %4125 = vst [vmem:[#allocation7_spill] sm:$0xff] %v3835_v49  ;;  %v3842_v54 = vpop.f32.mrb[37].mxu0  ;;  %2968 = vmatprep.subr.bf16.mxu1 %v2967_v1  ;;  %v1278_v4 = vmul.f32 %v1129_v45, %v3852_v56 }
 0x294   : > { %4126 = vst [vmem:[#allocation8_spill] sm:$0xff] %v3842_v54  ;;  %2970 = vmatpush1.bf16.msra.mxu1 %v2969_v48 }
 0x295   : > { %v1133_v7 = vpop.f32.mrb[18].mxu1 }
 0x296   : > { %v1280_v59 = vmul.f32 %v1133_v7, %v3847_v38  ;;  %v1135_v61 = vpop.f32.mrb[19].mxu1  ;;  %v3861_v2 = vpop.f32.mrb[38].mxu0 }
 0x297   : > { %4128 = vst [vmem:[#allocation10_spill] sm:$0xff] %v3861_v2  ;;  %v1281_v50 = vmul.f32 %v1135_v61, %v3857_v55  ;;  %v3865_v14 = vpop.f32.mrb[39].mxu0 }
 0x298   : > { %4129 = vst [vmem:[#allocation11_spill] sm:$0xff] %v3865_v14  ;;  %v2973_v52 = vpack.c.bf16 %v1280_v59, %v1277_v39  ;;  %v3923_v59 = vld [vmem:[%s4114_s4 + $0xe8] sm:$0xff] }
 0x299   : > { %v2971_v6 = vpack.c.bf16 %v1281_v50, %v1278_v4  ;;  %v2810_v8 = vpop.f32.mrb[20].mxu1  ;;  %v3928_v50 = vld [vmem:[%s4114_s4 + $0xd0] sm:$0xff] }
 0x29a   : > { %v1258_v40 = vmul.f32 %v2810_v8, %v3870_v5  ;;  %v1204_v16 = vpop.f32.mrb[21].mxu1 }
 0x29b   : > { %v1255_v18 = vmul.f32 %v1204_v16, %v3875_v46  ;;  %2972 = vmatprep.subr.bf16.mxu1 %v2971_v6 }
 0x29c   : > { %2974 = vmatpush1.bf16.msra.mxu1 %v2973_v52 }
 0x29d   : > { %v2975_v15 = vpack.c.bf16 %v1258_v40, %v1255_v18  ;;  %v2813_v20 = vpop.f32.mrb[22].mxu1 }
 0x29e   : > { %v1264_v58 = vmul.f32 %v2813_v20, %v3882_v0  ;;  %v1214_v21 = vpop.f32.mrb[23].mxu1 }
 0x29f   : > { %v1261_v42 = vmul.f32 %v1214_v21, %v3887_v17  ;;  %2976 = vmatprep.subr.bf16.mxu0 %v2975_v15  ;;  %2594 = vmatmul.mubr.msk.f32.vlgmr.msra.gmra.mrb[50].mxu1 %vm1615_vm3, %v3723_v32 }
 0x2a0   : > { %2978 = vmatpush3.bf16.msra.mxu0 %v2975_v15  ;;  %1692 = vmatprep.mubr.f32.mxu1 %v3163_v34  ;;  %v3911_v34 = vld [vmem:[%s4114_s4 + $0xb8] sm:$0xff] }
 0x2a1   : > { %v2979_v31 = vpack.c.bf16 %v1264_v58, %v1261_v42  ;;  %v2816_v35 = vpop.f32.mrb[24].mxu1 }
 0x2a2   : > { %v1270_v44 = vmul.f32 %v2816_v35, %v3897_v28  ;;  %v1224_v24 = vpop.f32.mrb[25].mxu1 }
 0x2a3   : > { %v1267_v32 = vmul.f32 %v1224_v24, %v3902_v9  ;;  %2980 = vmatprep.subr.bf16.mxu0 %v2979_v31  ;;  %2595 = vmatmul.mubr.msk.f32.gmra.mrb[52].mxu1 %vm1615_vm3, %v1600_v22 }
 0x2a4   : > { %2982 = vmatpush3.bf16.msra.mxu0 %v2979_v31  ;;  %1912 = vmatprep.mubr.f32.mxu1 %v3740_v29 }
 0x2a5   : > { %v2983_v48 = vpack.c.bf16 %v1270_v44, %v1267_v32  ;;  %v2819_v1 = vpop.f32.mrb[26].mxu1 }
 0x2a6   : > { %v1276_v45 = vmul.f32 %v2819_v1, %v3911_v34  ;;  %v1234_v7 = vpop.f32.mrb[27].mxu1 }
 0x2a7   : > { %v1273_v39 = vmul.f32 %v1234_v7, %v3916_v33  ;;  %2984 = vmatprep.subr.bf16.mxu0 %v2983_v48 }
 0x2a8   : > { %2986 = vmatpush3.bf16.msra.mxu0 %v2983_v48 }
 0x2a9   : > { %v2987_v61 = vpack.c.bf16 %v1276_v45, %v1273_v39  ;;  %v2822_v4 = vpop.f32.mrb[28].mxu1 }
 0x2aa   : > { %v1282_v52 = vmul.f32 %v2822_v4, %v3923_v59  ;;  %v1244_v6 = vpop.f32.mrb[29].mxu1 }
 0x2ab   : > { %v1279_v8 = vmul.f32 %v1244_v6, %v3928_v50  ;;  %2988 = vmatprep.subr.bf16.mxu0 %v2987_v61 }
 0x2ac   : > { %2990 = vmatpush3.bf16.msra.mxu0 %v2987_v61 }
 0x2ad   : > { %v2991_v40 = vpack.c.bf16 %v1282_v52, %v1279_v8  ;;  %v3932_v16 = vpop.f32.mrb[30].mxu1 }
 0x2ae   : > { %v1381_v18 = vpop.f32.mrb[31].mxu1 }
 0x2af   : > { %v3935_v15 = vmul.f32 %v1381_v18, %v3740_v29  ;;  %2992 = vmatprep.subr.bf16.mxu0 %v2991_v40 }
 0x2b0   : > { %2994 = vmatpush3.bf16.msra.mxu0 %v2991_v40 }
 0x2b1   : > { %v3937_v20 = vpop.f32.mrb[32].mxu1 }
 0x2b2   : > { %v3939_v58 = vpop.f32.mrb[33].mxu1 }
 0x2b3   : > { %2863 = vmatmul.mubr.msk.f32.vlgmr.msra.gmra.mrb[40].mxu0 %vm1615_vm3, %v1600_v22 }
 0x2b4   : > { %2869 = vmatprep.mubr.msk.f32.mxu0 %vm1780_vm2, %v3875_v46 }
 0x2b5   : > { %v3942_v21 = vpop.f32.mrb[34].mxu1 }
 0x2b6   : > { %v3944_v42 = vpop.f32.mrb[35].mxu1 }
 0x2b9   : > { %v3946_v31 = vpop.f32.mrb[36].mxu1 }
 0x2ba   : > { %v3948_v35 = vpop.f32.mrb[37].mxu1 }
 0x2bd   : > { %v3950_v44 = vpop.f32.mrb[38].mxu1 }
 0x2be   : > { %4130 = vst [vmem:[#allocation12_spill] sm:$0xff] %v3950_v44  ;;  %v3952_v29 = vpop.f32.mrb[39].mxu1 }
 0x2c1   : > { %v3954_v24 = vpop.f32.mrb[40].mxu1 }
 0x2c2   : > { %4131 = vst [vmem:[#allocation13_spill] sm:$0xff] %v3954_v24  ;;  %v3956_v32 = vpop.f32.mrb[41].mxu1 }
 0x2c3   : > { %4132 = vst [vmem:[#allocation14_spill] sm:$0xff] %v3956_v32 }
 0x2c5   : > { %v3958_v48 = vpop.f32.mrb[42].mxu1 }
 0x2c6   : > { %4133 = vst [vmem:[#allocation15_spill] sm:$0xff] %v3958_v48  ;;  %v3960_v1 = vpop.f32.mrb[43].mxu1 }
 0x2c7   : > { %4134 = vst [vmem:[#allocation16_spill] sm:$0xff] %v3960_v1 }
 0x2c9   : > { %v3962_v22 = vpop.f32.mrb[44].mxu1 }
 0x2ca   : > { %4135 = vst [vmem:[#allocation17_spill] sm:$0xff] %v3962_v22  ;;  %v3964_v45 = vpop.f32.mrb[45].mxu1 }
 0x2cb   : > { %4136 = vst [vmem:[#allocation18_spill] sm:$0xff] %v3964_v45 }
 0x2cd   : > { %v3966_v7 = vpop.f32.mrb[46].mxu1 }
 0x2ce   : > { %4137 = vst [vmem:[#allocation19_spill] sm:$0xff] %v3966_v7  ;;  %v3968_v39 = vpop.f32.mrb[47].mxu1 }
 0x2cf   : > { %4138 = vst [vmem:[#allocation20_spill] sm:$0xff] %v3968_v39 }
 0x2d1   : > { %v3970_v61 = vpop.f32.mrb[48].mxu1 }
 0x2d2   : > { %4139 = vst [vmem:[#allocation21_spill] sm:$0xff] %v3970_v61  ;;  %v3972_v4 = vpop.f32.mrb[49].mxu1 }
 0x2d3   : > { %4140 = vst [vmem:[#allocation22_spill] sm:$0xff] %v3972_v4 }
 0x372   : > { %v1688_v52 = vpop.f32.mrb[50].mxu1 }
 0x373   : > { %v1690_v6 = vpop.f32.mrb[51].mxu1  ;;  %v1774_v22 = vmul.f32 0.15811388, %v1688_v52 }
 0x374   : > { %v1775_v54 = vmul.f32 0.15811388, %v1690_v6 }
 0x376   : > { %v1694_v8 = vpop.f32.mrb[52].mxu1 }
 0x377   : > { %v1696_v40 = vpop.f32.mrb[53].mxu1  ;;  %v1777_v18 = vmul.f32 0.15811388, %v1694_v8 }
 0x378   : > { %v1778_v45 = vmul.f32 0.15811388, %v1696_v40 }
 0x379   : > { %v1786_v39 = vsel %vm1003_vm1, %v1777_v18, -inf }
 0x37a   : > { %v1787_v47 = vsel %vm1003_vm1, %v1778_v45, -inf  ;;  %vm3000_vm1 = vmpackc.low %vm1780_vm2, %vm1780_vm2 }
 0x386   : > { %v2864_v2 = vpop.f32.mrb[40].mxu0 }
 0x387   : > { %v1779_v14 = vmul.f32 0.15811388, %v2864_v2  ;;  %v1765_v49 = vpop.f32.mrb[41].mxu0 }
 0x388   : > { %v1776_v7 = vmul.f32 0.15811388, %v1765_v49 }
 0x389   : > { %v1789_v61 = vsel %vm1788_vm4, %v1779_v14, -inf }
 0x38a   : > { %v1781_v4 = vsel %vm1780_vm2, %v1776_v7, -inf  ;;  %v1790_v36 = vmax.f32 %v1786_v39, %v1789_v61 }
 0x38b   : > { %v1782_v60 = vmax.f32 %v1774_v22, %v1781_v4 }
 0x38c   : > { %v1791_v8 = vmax.f32 %v1790_v36, %v1787_v47 }
 0x38d   : > { %v1783_v48 = vmax.f32 %v1782_v60, %v1775_v54 }
 0x38f   : > { %1784 = vmax.xlane.f32.xlu0 %v1783_v48 }
 0x393   : > { %1792 = vmax.xlane.f32.xlu0 %v1791_v8 }
 0x41c   : > { %v1785_v2 = vpop.xlane.xlu0 %1784 }
 0x41d   : > { %v1794_v1 = vsub.f32 %v1774_v22, %v1785_v2  ;;  %v1795_v24 = vsub.f32 %v1775_v54, %v1785_v2  ;;  %v1796_v49 = vsub.f32 %v1776_v7, %v1785_v2 }
 0x41f   : > { %v1800_v52 = vmul.f32 1.442695, %v1794_v1  ;;  %v1802_v43 = vmul.f32 1.442695, %v1795_v24  ;;  %v1804_v30 = vmul.f32 1.442695, %v1796_v49 }
 0x420   : > { %v1793_v38 = vpop.xlane.xlu0 %1792 }
 0x421   : > { %v1797_v32 = vsub.f32 %v1777_v18, %v1793_v38  ;;  %v1798_v44 = vsub.f32 %v1778_v45, %v1793_v38  ;;  %v1799_v6 = vsub.f32 %v1779_v14, %v1793_v38  ;;  %3117 = vpow2.f32 %v1800_v52 }
 0x422   : > { %3119 = vpow2.f32 %v1802_v43  ;;  %v1557_v43 = vmul.f32 %v3939_v58, %v3745_v26  ;;  %v1556_v14 = vmul.f32 %v3937_v20, %v3735_v11  ;;  %v4143_v58 = vld [vmem:[#allocation9_spill] sm:$0xff] }
 0x423   : > { %v1806_v60 = vmul.f32 1.442695, %v1797_v32  ;;  %v1808_v39 = vmul.f32 1.442695, %v1798_v44  ;;  %v1810_v48 = vmul.f32 1.442695, %v1799_v6  ;;  %3121 = vpow2.f32 %v1804_v30 }
 0x424   : > { %v1553_v30 = vmul.f32 %v3932_v16, %v3730_v10  ;;  %v1560_v44 = vmul.f32 %v3944_v42, %v3764_v53 }
 0x425   : > { %3123 = vpow2.f32 %v1806_v60 }
 0x426   : > { %3125 = vpow2.f32 %v1808_v39 }
 0x427   : > { %3127 = vpow2.f32 %v1810_v48 }
 0x42b   : > { %v3118_v47 = vpop.eup %3117 }
 0x42c   : > { %v3120_v36 = vpop.eup %3119 }
 0x42d   : > { %v3122_v54 = vpop.eup %3121 }
 0x42f   : > { %v3124_v22 = vpop.eup %3123 }
 0x430   : > { %v3126_v1 = vpop.eup %3125  ;;  %v2997_v24 = vpack.c.bf16 %v3124_v22, %v3118_v47 }
 0x431   : > { %v3128_v7 = vpop.eup %3127  ;;  %v2995_v61 = vpack.c.bf16 %v3126_v1, %v3120_v36 }
 0x432   : > { %v2999_v38 = vpack.c.bf16 %v3128_v7, %v3122_v54 }
 0x433   : > { %2996 = vmatprep.subr.bf16.mxu1 %v2995_v61 }
 0x434   : > { %3001 = vmatprep.subr.msk.bf16.mxu0 %vm3000_vm1, %v2999_v38  ;;  %2998 = vmatpush1.bf16.xpose.msra.mxu1 %v2997_v24 }
 0x435   : > { %3004 = vmatpush3.bf16.xpose.msk.msra.mxu0 %vm3000_vm1, %v2999_v38  ;;  %3011 = vmatprep.subr.msk.bf16.mxu1 %vm3000_vm1, %v2999_v38 }
 0x436   : > { %3006 = vmatprep.subr.bf16.mxu0 %v2995_v61 }
 0x43b   : > { %1913 = vmatmul.mubr.f32.vlgmr.msra.gmra.mrb[54].mxu1 %v3730_v10  ;;  %v1559_v10 = vmul.f32 %v3942_v21, %v3754_v62  ;;  %v4145_v21 = vld [vmem:[#allocation4_spill] sm:$0xff] }
 0x43c   : > { %2870 = vmatmul.mubr.msk.f32.vlgmr.msra.gmra.mrb[42].mxu0 %vm1780_vm2, %v3870_v5  ;;  %3014 = vmatpush3.bf16.xpose.msk.msra.mxu1 %vm3000_vm1, %v2999_v38  ;;  %v1561_v42 = vmul.f32 %v4145_v21, %v3887_v17 }
 0x43d   : > { %3008 = vmatpush1.bf16.xpose.msra.mxu0 %v2997_v24  ;;  %1917 = vmatprep.mubr.f32.mxu1 %v3745_v26  ;;  %v1563_v26 = vmul.f32 %v3948_v35, %v3769_v63 }
 0x43e   : > { %2872 = vmatprep.mubr.msk.f32.mxu0 %vm1780_vm2, %v3887_v17  ;;  %v4150_v17 = vld [vmem:[#allocation15_spill] sm:$0xff] }
 0x43f   : > { %1918 = vmatmul.mubr.f32.gmra.mrb[56].mxu1 %v3735_v11  ;;  %v1562_v11 = vmul.f32 %v3946_v31, %v3759_v57  ;;  %v1571_v32 = vmul.f32 %v4150_v17, %v3808_v25 }
 0x440   : > { %2873 = vmatmul.mubr.msk.f32.gmra.mrb[44].mxu0 %vm1780_vm2, %v3882_v0  ;;  %1922 = vmatprep.mubr.f32.mxu1 %v3764_v53  ;;  %v1566_v53 = vmul.f32 %v3952_v29, %v3788_v12 }
 0x441   : > { %2875 = vmatprep.mubr.msk.f32.mxu0 %vm1780_vm2, %v3902_v9 }
 0x443   : > { %1923 = vmatmul.mubr.f32.gmra.mrb[58].mxu1 %v3754_v62  ;;  %v1555_v62 = vmul.f32 %v3801_v41, %v3875_v46  ;;  %v4146_v41 = vld [vmem:[#allocation13_spill] sm:$0xff] }
 0x444   : > { %2876 = vmatmul.mubr.msk.f32.gmra.mrb[46].mxu0 %vm1780_vm2, %v3897_v28  ;;  %1927 = vmatprep.mubr.f32.mxu1 %v3769_v63  ;;  %v4141_v63 = vld [vmem:[#allocation12_spill] sm:$0xff]  ;;  %v1568_v46 = vmul.f32 %v4146_v41, %v3783_v3 }
 0x445   : > { %2878 = vmatprep.mubr.msk.f32.mxu0 %vm1780_vm2, %v3916_v33  ;;  %v1565_v16 = vmul.f32 %v4141_v63, %v3778_v37 }
 0x447   : > { %1928 = vmatmul.mubr.f32.gmra.mrb[60].mxu1 %v3759_v57  ;;  %v4144_v57 = vld [vmem:[#allocation2_spill] sm:$0xff] }
 0x448   : > { %2879 = vmatmul.mubr.msk.f32.gmra.mrb[48].mxu0 %vm1780_vm2, %v3911_v34  ;;  %1932 = vmatprep.mubr.f32.mxu1 %v3788_v12  ;;  %v1558_v12 = vmul.f32 %v4144_v57, %v3870_v5  ;;  %v4149_v5 = vld [vmem:[#allocation6_spill] sm:$0xff] }
 0x449   : > { %2881 = vmatprep.mubr.msk.f32.mxu0 %vm1780_vm2, %v3928_v50  ;;  %v1567_v29 = vmul.f32 %v4149_v5, %v3902_v9  ;;  %v4154_v9 = vld [vmem:[#allocation17_spill] sm:$0xff] }
 0x44a   : > { %v1574_v18 = vmul.f32 %v4154_v9, %v3815_v27 }
 0x44b   : > { %1933 = vmatmul.mubr.f32.gmra.mrb[62].mxu1 %v3778_v37  ;;  %v4147_v37 = vld [vmem:[#allocation16_spill] sm:$0xff] }
 0x44c   : > { %2882 = vmatmul.mubr.msk.f32.gmra.mrb[50].mxu0 %vm1780_vm2, %v3923_v59  ;;  %1937 = vmatprep.mubr.f32.mxu1 %v3793_v13  ;;  %v1572_v31 = vmul.f32 %v4147_v37, %v3820_v23 }
 0x44d   : > { %2172 = vmatprep.mubr.f32.mxu0 %v3935_v15  ;;  %v4142_v15 = vld [vmem:[#allocation14_spill] sm:$0xff] }
 0x44e   : > { %v1569_v20 = vmul.f32 %v4142_v15, %v3793_v13  ;;  %v4148_v13 = vld [vmem:[#allocation3_spill] sm:$0xff] }
 0x44f   : > { %1938 = vmatmul.mubr.f32.gmra.mrb[64].mxu1 %v3783_v3  ;;  %v1564_v35 = vmul.f32 %v4148_v13, %v3882_v0  ;;  %v4151_v3 = vld [vmem:[#allocation18_spill] sm:$0xff]  ;;  %v4153_v0 = vld [vmem:[#allocation8_spill] sm:$0xff] }
 0x450   : > { %2173 = vmatmul.mubr.f32.vlgmr.msra.gmra.mrb[52].mxu0 %v1553_v30  ;;  %1942 = vmatprep.mubr.f32.mxu1 %v3820_v23  ;;  %v1575_v45 = vmul.f32 %v4151_v3, %v3825_v19  ;;  %v4152_v23 = vld [vmem:[#allocation5_spill] sm:$0xff]  ;;  %v1573_v40 = vmul.f32 %v4153_v0, %v3916_v33  ;;  %v4158_v33 = vld [vmem:[#allocation19_spill] sm:$0xff] }
 0x451   : > { %2177 = vmatprep.mubr.f32.mxu0 %v1557_v43  ;;  %v1570_v4 = vmul.f32 %v4152_v23, %v3897_v28  ;;  %v4157_v28 = vld [vmem:[#allocation11_spill] sm:$0xff]  ;;  %v1577_v52 = vmul.f32 %v4158_v33, %v3840_v51 }
 0x452   : > { %v1579_v49 = vmul.f32 %v4157_v28, %v3928_v50 }
 0x453   : > { %1943 = vmatmul.mubr.f32.gmra.mrb[66].mxu1 %v3808_v25  ;;  %v4155_v25 = vld [vmem:[#allocation20_spill] sm:$0xff] }
 0x454   : > { %2178 = vmatmul.mubr.f32.gmra.mrb[54].mxu0 %v1556_v14  ;;  %1947 = vmatprep.mubr.f32.mxu1 %v3825_v19  ;;  %v1578_v8 = vmul.f32 %v4155_v25, %v3852_v56  ;;  %v4156_v19 = vld [vmem:[#allocation7_spill] sm:$0xff] }
 0x455   : > { %2182 = vmatprep.mubr.f32.mxu0 %v1560_v44  ;;  %v1576_v2 = vmul.f32 %v4156_v19, %v3911_v34  ;;  %v4161_v34 = vld [vmem:[#allocation21_spill] sm:$0xff] }
 0x456   : > { %v1580_v39 = vmul.f32 %v4161_v34, %v4143_v58 }
 0x457   : > { %1948 = vmatmul.mubr.f32.gmra.mrb[68].mxu1 %v3815_v27  ;;  %v4159_v27 = vld [vmem:[#allocation22_spill] sm:$0xff] }
 0x458   : > { %2183 = vmatmul.mubr.f32.gmra.mrb[56].mxu0 %v1559_v10  ;;  %1952 = vmatprep.mubr.f32.mxu1 %v3852_v56  ;;  %v1581_v6 = vmul.f32 %v4159_v27, %v3857_v55  ;;  %v4160_v56 = vld [vmem:[#allocation10_spill] sm:$0xff] }
 0x459   : > { %2187 = vmatprep.mubr.f32.mxu0 %v1563_v26  ;;  %v1582_v60 = vmul.f32 %v4160_v56, %v3923_v59 }
 0x45b   : > { %1953 = vmatmul.mubr.f32.gmra.mrb[70].mxu1 %v3840_v51 }
 0x45c   : > { %2188 = vmatmul.mubr.f32.gmra.mrb[58].mxu0 %v1562_v11  ;;  %1957 = vmatprep.mubr.f32.mxu1 %v3857_v55 }
 0x45d   : > { %2192 = vmatprep.mubr.f32.mxu0 %v1566_v53 }
 0x45f   : > { %1958 = vmatmul.mubr.f32.gmra.mrb[72].mxu1 %v4143_v58 }
 0x460   : > { %2193 = vmatmul.mubr.f32.gmra.mrb[60].mxu0 %v1565_v16  ;;  %2888 = vmatprep.mubr.msk.f32.mxu1 %vm1780_vm2, %v1555_v62 }
 0x461   : > { %2197 = vmatprep.mubr.f32.mxu0 %v1569_v20 }
 0x463   : > { %2889 = vmatmul.mubr.msk.f32.vlgmr.msra.gmra.mrb[74].mxu1 %vm1780_vm2, %v1558_v12 }
 0x464   : > { %2198 = vmatmul.mubr.f32.gmra.mrb[62].mxu0 %v1568_v46  ;;  %2891 = vmatprep.mubr.msk.f32.mxu1 %vm1780_vm2, %v1561_v42 }
 0x465   : > { %2202 = vmatprep.mubr.f32.mxu0 %v1572_v31 }
 0x467   : > { %2892 = vmatmul.mubr.msk.f32.gmra.mrb[76].mxu1 %vm1780_vm2, %v1564_v35 }
 0x468   : > { %2203 = vmatmul.mubr.f32.gmra.mrb[64].mxu0 %v1571_v32  ;;  %2894 = vmatprep.mubr.msk.f32.mxu1 %vm1780_vm2, %v1567_v29 }
 0x469   : > { %2207 = vmatprep.mubr.f32.mxu0 %v1575_v45 }
 0x46b   : > { %2895 = vmatmul.mubr.msk.f32.gmra.mrb[78].mxu1 %vm1780_vm2, %v1570_v4 }
 0x46c   : > { %2208 = vmatmul.mubr.f32.gmra.mrb[66].mxu0 %v1574_v18  ;;  %2897 = vmatprep.mubr.msk.f32.mxu1 %vm1780_vm2, %v1573_v40 }
 0x46d   : > { %2212 = vmatprep.mubr.f32.mxu0 %v1578_v8 }
 0x46f   : > { %2898 = vmatmul.mubr.msk.f32.gmra.mrb[80].mxu1 %vm1780_vm2, %v1576_v2 }
 0x470   : > { %2213 = vmatmul.mubr.f32.gmra.mrb[68].mxu0 %v1577_v52  ;;  %2900 = vmatprep.mubr.msk.f32.mxu1 %vm1780_vm2, %v1579_v49 }
 0x471   : > { %2217 = vmatprep.mubr.f32.mxu0 %v1581_v6 }
 0x473   : > { %2901 = vmatmul.mubr.msk.f32.gmra.mrb[82].mxu1 %vm1780_vm2, %v1582_v60 }
 0x474   : > { %2218 = vmatmul.mubr.f32.gmra.mrb[70].mxu0 %v1580_v39 }
 0x50e   : > { %v1914_v50 = vpop.f32.mrb[54].mxu1 }
 0x50f   : > { %v2871_v51 = vpop.f32.mrb[42].mxu0  ;;  %v1916_v48 = vpop.f32.mrb[55].mxu1 }
 0x510   : > { %v2029_v47 = vpop.f32.mrb[43].mxu0 }
 0x511   : > { %v2030_v55 = vadd.f32 %v2029_v47, %v1914_v50 }
 0x512   : > { %v1919_v36 = vpop.f32.mrb[56].mxu1 }
 0x513   : > { %v2035_v54 = vadd.f32 %v2871_v51, %v1919_v36  ;;  %v1921_v22 = vpop.f32.mrb[57].mxu1  ;;  %v2874_v1 = vpop.f32.mrb[44].mxu0 }
 0x514   : > { %v2039_v24 = vpop.f32.mrb[45].mxu0 }
 0x515   : > { %3129 = vrcp.f32 %v2035_v54 }
 0x516   : > { %v1924_v7 = vpop.f32.mrb[58].mxu1  ;;  %3131 = vrcp.f32 %v2030_v55 }
 0x517   : > { %v2040_v61 = vadd.f32 %v2039_v24, %v1924_v7  ;;  %v1926_v59 = vpop.f32.mrb[59].mxu1  ;;  %v2877_v38 = vpop.f32.mrb[46].mxu0 }
 0x518   : > { %v2049_v30 = vpop.f32.mrb[47].mxu0 }
 0x51a   : > { %v1929_v43 = vpop.f32.mrb[60].mxu1 }
 0x51b   : > { %v2045_v14 = vadd.f32 %v2874_v1, %v1929_v43  ;;  %v1931_v44 = vpop.f32.mrb[61].mxu1  ;;  %v2880_v10 = vpop.f32.mrb[48].mxu0 }
 0x51c   : > { %v2059_v26 = vpop.f32.mrb[49].mxu0 }
 0x51d   : > { %3133 = vrcp.f32 %v2045_v14 }
 0x51e   : > { %v1934_v11 = vpop.f32.mrb[62].mxu1  ;;  %3135 = vrcp.f32 %v2040_v61 }
 0x51f   : > { %v2050_v53 = vadd.f32 %v2049_v30, %v1934_v11  ;;  %v1936_v62 = vpop.f32.mrb[63].mxu1  ;;  %v2883_v63 = vpop.f32.mrb[50].mxu0 }
 0x520   : > { %v2069_v16 = vpop.f32.mrb[51].mxu0  ;;  %v3130_v28 = vpop.eup %3129 }
 0x521   : > { %v3132_v52 = vpop.eup %3131 }
 0x522   : > { %v1939_v15 = vpop.f32.mrb[64].mxu1 }
 0x523   : > { %v2055_v20 = vadd.f32 %v2877_v38, %v1939_v15  ;;  %v2174_v58 = vpop.f32.mrb[52].mxu0  ;;  %v1941_v57 = vpop.f32.mrb[65].mxu1 }
 0x524   : > { %v2176_v12 = vpop.f32.mrb[53].mxu0 }
 0x525   : > { %3137 = vrcp.f32 %v2055_v20 }
 0x526   : > { %v1944_v21 = vpop.f32.mrb[66].mxu1  ;;  %3139 = vrcp.f32 %v2050_v53 }
 0x527   : > { %v2060_v42 = vadd.f32 %v2059_v26, %v1944_v21  ;;  %v2179_v41 = vpop.f32.mrb[54].mxu0  ;;  %v1946_v46 = vpop.f32.mrb[67].mxu1 }
 0x528   : > { %v2181_v37 = vpop.f32.mrb[55].mxu0  ;;  %v3134_v50 = vpop.eup %3133 }
 0x529   : > { %v3136_v47 = vpop.eup %3135 }
 0x52a   : > { %v1949_v31 = vpop.f32.mrb[68].mxu1 }
 0x52b   : > { %v2065_v13 = vadd.f32 %v2880_v10, %v1949_v31  ;;  %v2184_v35 = vpop.f32.mrb[56].mxu0  ;;  %v1951_v5 = vpop.f32.mrb[69].mxu1 }
 0x52c   : > { %v2186_v29 = vpop.f32.mrb[57].mxu0 }
 0x52d   : > { %3141 = vrcp.f32 %v2065_v13 }
 0x52e   : > { %v1954_v17 = vpop.f32.mrb[70].mxu1  ;;  %3143 = vrcp.f32 %v2060_v42 }
 0x52f   : > { %v2070_v32 = vadd.f32 %v2069_v16, %v1954_v17  ;;  %v2189_v3 = vpop.f32.mrb[58].mxu0  ;;  %v1956_v45 = vpop.f32.mrb[71].mxu1 }
 0x530   : > { %v2191_v23 = vpop.f32.mrb[59].mxu0  ;;  %v3138_v7 = vpop.eup %3137 }
 0x531   : > { %3145 = vrcp.f32 %v2070_v32  ;;  %v3140_v38 = vpop.eup %3139 }
 0x532   : > { %v1959_v4 = vpop.f32.mrb[72].mxu1 }
 0x533   : > { %v2075_v0 = vadd.f32 %v2883_v63, %v1959_v4  ;;  %v2194_v40 = vpop.f32.mrb[60].mxu0  ;;  %v1961_v9 = vpop.f32.mrb[73].mxu1 }
 0x534   : > { %v2196_v18 = vpop.f32.mrb[61].mxu0 }
 0x535   : > { %3147 = vrcp.f32 %v2075_v0 }
 0x536   : > { %v2890_v25 = vpop.f32.mrb[74].mxu1 }
 0x537   : > { %v2199_v8 = vpop.f32.mrb[62].mxu0  ;;  %v2295_v19 = vadd.f32 %v2890_v25, %v2179_v41  ;;  %v2289_v2 = vpop.f32.mrb[75].mxu1 }
 0x538   : > { %v2201_v49 = vpop.f32.mrb[63].mxu0  ;;  %v2290_v33 = vadd.f32 %v2289_v2, %v2174_v58  ;;  %v3142_v53 = vpop.eup %3141 }
 0x539   : > { %v2349_v27 = vmul.f32 %v3130_v28, %v2295_v19  ;;  %v3144_v16 = vpop.eup %3143 }
 0x53a   : > { %v2348_v6 = vmul.f32 %v3132_v52, %v2290_v33  ;;  %v2893_v56 = vpop.f32.mrb[76].mxu1 }
 0x53b   : > { %v2204_v60 = vpop.f32.mrb[64].mxu0  ;;  %v2305_v34 = vadd.f32 %v2893_v56, %v2189_v3  ;;  %v2299_v39 = vpop.f32.mrb[77].mxu1 }
 0x53c   : > { %v2206_v51 = vpop.f32.mrb[65].mxu0  ;;  %v2300_v48 = vadd.f32 %v2299_v39, %v2184_v35  ;;  %v3146_v42 = vpop.eup %3145 }
 0x53d   : > { %v2351_v55 = vmul.f32 %v3134_v50, %v2305_v34 }
 0x53e   : > { %v2350_v36 = vmul.f32 %v3136_v47, %v2300_v48  ;;  %v2896_v54 = vpop.f32.mrb[78].mxu1 }
 0x53f   : > { %v2209_v22 = vpop.f32.mrb[66].mxu0  ;;  %v2315_v1 = vadd.f32 %v2896_v54, %v2199_v8  ;;  %v2309_v24 = vpop.f32.mrb[79].mxu1 }
 0x540   : > { %v2211_v61 = vpop.f32.mrb[67].mxu0  ;;  %v2310_v59 = vadd.f32 %v2309_v24, %v2194_v40  ;;  %v3148_v13 = vpop.eup %3147 }
 0x541   : > { %v2353_v30 = vmul.f32 %v3138_v7, %v2315_v1 }
 0x542   : > { %v2352_v43 = vmul.f32 %v3140_v38, %v2310_v59  ;;  %v2899_v14 = vpop.f32.mrb[80].mxu1 }
 0x543   : > { %v2358_v44 = vmul.f32 %v2353_v30, %v2348_v6  ;;  %v2214_v10 = vpop.f32.mrb[68].mxu0  ;;  %v2325_v26 = vadd.f32 %v2899_v14, %v2209_v22  ;;  %v2319_v11 = vpop.f32.mrb[81].mxu1 }
 0x544   : > { %v2216_v62 = vpop.f32.mrb[69].mxu0  ;;  %v2320_v63 = vadd.f32 %v2319_v11, %v2204_v60 }
 0x545   : > { %v2355_v15 = vmul.f32 %v3142_v53, %v2325_v26  ;;  %v2363_v35 = vsel %vm972_vm9, %v2358_v44, 0.0 }
 0x546   : > { %v2354_v20 = vmul.f32 %v3144_v16, %v2320_v63  ;;  %v2902_v58 = vpop.f32.mrb[82].mxu1 }
 0x547   : > { %v2360_v57 = vmul.f32 %v2355_v15, %v2350_v36  ;;  %v2219_v12 = vpop.f32.mrb[70].mxu0  ;;  %v2329_v21 = vpop.f32.mrb[83].mxu1 }
 0x548   : > { %v2359_v41 = vmul.f32 %v2354_v20, %v2349_v27  ;;  %v2335_v46 = vadd.f32 %v2902_v58, %v2219_v12  ;;  %v2221_v37 = vpop.f32.mrb[71].mxu0  ;;  %v2330_v31 = vadd.f32 %v2329_v21, %v2214_v10 }
 0x549   : > { %v2366_v23 = vsel %vm972_vm9, %v2360_v57, 0.0 }
 0x54a   : > { %v2364_v5 = vsel %vm972_vm9, %v2359_v41, 0.0  ;;  %v2357_v29 = vmul.f32 %v3148_v13, %v2335_v46  ;;  %v2356_v17 = vmul.f32 %v3146_v42, %v2330_v31 }
 0x54b   : > { %v2365_v32 = vadd.f32 %v2364_v5, %v2363_v35 }
 0x54c   : > { %v2361_v3 = vmul.f32 %v2356_v17, %v2351_v55  ;;  %v2362_v45 = vmul.f32 %v2357_v29, %v2352_v43 }
 0x54d   : > { %v2367_v4 = vadd.f32 %v2366_v23, %v2365_v32 }
 0x54e   : > { %v2368_v0 = vsel %vm972_vm9, %v2361_v3, 0.0  ;;  %v2370_v9 = vsel %vm972_vm9, %v2362_v45, 0.0 }
 0x54f   : > { %v2369_v40 = vadd.f32 %v2368_v0, %v2367_v4 }
 0x551   : > { %v2371_v18 = vadd.f32 %v2370_v9, %v2369_v40 }
 0x553   : > { %2372 = vadd.xlane.f32.xlu0 %v2371_v18 }
 0x5e0   : > { %v2373_v25 = vpop.xlane.xlu0 %2372 }
 0x5e1   : > { %v2374_v8 = vrot.slane %v2373_v25, 4 }
 0x5e3   : > { %v2375_v19 = vadd.f32 %v2374_v8, %v2373_v25 }
 0x5e5   : > { %v2376_v2 = vrot.slane %v2375_v19, 2 }
 0x5e7   : > { %v2377_v28 = vadd.f32 %v2376_v2, %v2375_v19 }
 0x5e9   : > { %v2378_v49 = vrot.slane %v2377_v28, 1 }
 0x5eb   : > { %v2379_v33 = vadd.f32 %v2378_v49, %v2377_v28 }
 0x5ed   : > { %3016 = vpush %v2379_v33 }
 0x61e   : > { %s3017_s17 = spop %3016 }
 0x61f   : > { %s2383_s21 = smul.f32 0.0017857143, %s3017_s17 }
 0x621   : > { %v2384_v52 = vstv %s2383_s21 }
 0x622   : > { %v2385_v27 = vsub.f32 %v2358_v44, %v2384_v52  ;;  %v2386_v6 = vsub.f32 %v2359_v41, %v2384_v52  ;;  %v2387_v56 = vsub.f32 %v2360_v57, %v2384_v52  ;;  %v2388_v60 = vsub.f32 %v2361_v3, %v2384_v52 }
 0x623   : > { %v2389_v50 = vsub.f32 %v2362_v45, %v2384_v52 }
 0x624   : > { %v2390_v34 = vmul.f32 %v2385_v27, %v2385_v27  ;;  %v2391_v39 = vmul.f32 %v2386_v6, %v2386_v6  ;;  %v2392_v51 = vmul.f32 %v2387_v56, %v2387_v56  ;;  %v2393_v48 = vmul.f32 %v2388_v60, %v2388_v60 }
 0x625   : > { %v2394_v54 = vmul.f32 %v2389_v50, %v2389_v50 }
 0x626   : > { %v2395_v47 = vsel %vm972_vm9, %v2390_v34, 0.0  ;;  %v2396_v55 = vsel %vm972_vm9, %v2391_v39, 0.0  ;;  %v2398_v22 = vsel %vm972_vm9, %v2392_v51, 0.0  ;;  %v2400_v24 = vsel %vm972_vm9, %v2393_v48, 0.0 }
 0x627   : > { %v2397_v36 = vadd.f32 %v2396_v55, %v2395_v47  ;;  %v2402_v61 = vsel %vm972_vm9, %v2394_v54, 0.0 }
 0x629   : > { %v2399_v1 = vadd.f32 %v2398_v22, %v2397_v36 }
 0x62b   : > { %v2401_v7 = vadd.f32 %v2400_v24, %v2399_v1 }
 0x62d   : > { %v2403_v59 = vadd.f32 %v2402_v61, %v2401_v7 }
 0x62f   : > { %2404 = vadd.xlane.f32.xlu0 %v2403_v59 }
 0x6bc   : > { %v2405_v38 = vpop.xlane.xlu0 %2404 }
 0x6bd   : > { %v2406_v30 = vrot.slane %v2405_v38, 4 }
 0x6bf   : > { %v2407_v43 = vadd.f32 %v2406_v30, %v2405_v38 }
 0x6c1   : > { %v2408_v14 = vrot.slane %v2407_v43, 2 }
 0x6c3   : > { %v2409_v44 = vadd.f32 %v2408_v14, %v2407_v43 }
 0x6c5   : > { %v2410_v10 = vrot.slane %v2409_v44, 1 }
 0x6c7   : > { %v2411_v26 = vadd.f32 %v2410_v10, %v2409_v44 }
 0x6c9   : > { %3018 = vpush %v2411_v26 }
 0x6fa   : > { %s3019_s22 = spop %3018 }
 0x6fb   : > { %s2415_s23 = smul.f32 0.0017857143, %s3019_s22 }
 0x6fd   : > { %s2416_s24 = sadd.f32 1e-05, %s2415_s23 }
 0x6ff   : > { %v2417_v11 = vstv %s2416_s24 }
 0x700   : > { %3149 = vrsqrt.f32 %v2417_v11 }
 0x70a   : > { %v3150_v53 = vpop.eup %3149 }
 0x70b   : > { %3020 = vpush %v3150_v53 }
 0x73c   : > { %s3021_s25 = spop %3020 }
 0x73d   : > { %v2420_v62 = vstv %s3021_s25 }
 0x73e   : > { %v2421_v63 = vmul.f32 %v2420_v62, %v2385_v27  ;;  %v2422_v16 = vmul.f32 %v2420_v62, %v2386_v6  ;;  %v2423_v15 = vmul.f32 %v2420_v62, %v2387_v56  ;;  %v2424_v20 = vmul.f32 %v2420_v62, %v2388_v60 }
 0x73f   : > { %v2425_v58 = vmul.f32 %v2420_v62, %v2389_v50 }
 0x740   : > { %2426 = vst.msk [vmem:[%s224_s28] sm:$0xff] %vm972_vm9, %v2421_v63  ;;  %2427 = vst.msk [vmem:[%s224_s28 + $0x8] sm:$0xff] %vm972_vm9, %v2422_v16 }
 0x741   : > { %2428 = vst.msk [vmem:[%s224_s28 + $0x10] sm:$0xff] %vm972_vm9, %v2423_v15  ;;  %2429 = vst.msk [vmem:[%s224_s28 + $0x18] sm:$0xff] %vm972_vm9, %v2424_v20 }
 0x742   : > { %2430 = vst.msk [vmem:[%s224_s28 + $0x20] sm:$0xff] %vm972_vm9, %v2425_v58 }
 0x743 PF: > { %s15_s18 = sadd.s32 1, %s3157_s18  }
 0x744   : > { %p12_p4 = scmp.ge.s32.totalorder %s15_s18, 4  }
 0x746   :  { %14 = sbr.rel (!%p12_p4) target bundleno = 1 (0x1), region = 70 }

</bundles_post_ra>
